<compile_context>
chip_gen: v5e
topology: v5e:2x2
jax: 0.10.0
libtpu: 0.0.40
codegen_flags: <defaults>
</compile_context>

<pallas_src>
import functools

import jax
import jax.numpy as jnp
from jax import lax
from jax.experimental import pallas as pl
from jax.experimental.pallas import tpu as pltpu

_SAMPLING_EPS = 1e-5
NUM_LOGPROBS = 4            # max_num_logprobs
_PAD_LOGIT = -1e30          # value used for masked vocab-tail columns
_BIG_COL = 2 ** 30          # "infinity" column index for arg-min tie breaks


def _round_up(x, m):
    return ((x + m - 1) // m) * m


def _cdiv(a, b):
    return -(-a // b)


def _gumbel_noise(shape, row0, col, seed_u32):
    """Counter-based hash -> Gumbel(0,1); deterministic in (seed, global row,
    global col) and independent of the tiling.  u is strictly in (0,1) so both
    logs are finite."""
    r = (lax.broadcasted_iota(jnp.int32, shape, 0) + row0).astype(jnp.uint32)
    c = col.astype(jnp.uint32)                          # reuse the column iota
    h = r * jnp.uint32(0x9E3779B1) + c * jnp.uint32(0x85EBCA6B)
    h = h ^ seed_u32
    h = h ^ (h >> 15)
    h = h * jnp.uint32(0xC2B2AE35)
    h = h ^ (h >> 13)
    mant = (h >> 9) | jnp.uint32(0x3F800000)            # float32 in [1, 2)
    u = lax.bitcast_convert_type(mant, jnp.float32) - 1.0 + jnp.float32(2.0 ** -25)
    return -jnp.log(-jnp.log(u))                        # Gumbel(0,1), finite


def _sampler_kernel(vocab_size, num_logprobs,
                    meta_ref,                           # SMEM: [seed, flags_tile0, ...]
                    logits_ref, temp_ref, minp_ref,     # VMEM input blocks
                    int_out_ref, fp_out_ref,            # VMEM output blocks
                    topk_val_ref, topk_idx_ref, sumexp_ref,
                    best_noisy_ref, best_logit_ref, best_idx_ref, rank_ref):
    K = num_logprobs
    TT, TV = logits_ref.shape
    i = pl.program_id(0)
    p = pl.program_id(1)
    k = pl.program_id(2)
    last_k = pl.num_programs(2) - 1

    flags = meta_ref[1 + i]
    rand_here = (flags & 1) != 0            # some row of this tile samples randomly
    minp_here = (flags & 2) != 0            # ... and some random row has min_p > 0
    race_in_p0 = jnp.logical_and(rand_here, jnp.logical_not(minp_here))
    run_p1 = jnp.logical_and(rand_here, minp_here)

    def load_block():
        x = logits_ref[...].astype(jnp.float32)
        col = lax.broadcasted_iota(jnp.int32, (TT, TV), 1) + k * TV
        if vocab_size % TV != 0:            # static: mask the vocab tail in-kernel
            x = jnp.where(col < vocab_size, x, _PAD_LOGIT)
        return x, col

    def race_update(x, col, scaled):
        """One Gumbel-max race step; keeps the best noisy score seen so far."""
        seed_u = meta_ref[0].astype(jnp.uint32)
        noisy = scaled + _gumbel_noise((TT, TV), i * TT, col, seed_u)
        bn = jnp.max(noisy, axis=-1, keepdims=True)
        bi = jnp.min(jnp.where(noisy == bn, col, _BIG_COL), axis=-1, keepdims=True)
        bl = jnp.sum(jnp.where(col == bi, x, 0.0), axis=-1, keepdims=True)
        better = bn > best_noisy_ref[...]
        best_idx_ref[...] = jnp.where(better, bi, best_idx_ref[...])
        best_logit_ref[...] = jnp.where(better, bl, best_logit_ref[...])
        best_noisy_ref[...] = jnp.maximum(best_noisy_ref[...], bn)

    # ------------------------- per-token-tile init -------------------------
    @pl.when(jnp.logical_and(p == 0, k == 0))
    def _init():
        topk_val_ref[...] = jnp.full((TT, 2 * K), -jnp.inf, jnp.float32)
        topk_idx_ref[...] = jnp.zeros((TT, 2 * K), jnp.int32)
        sumexp_ref[...] = jnp.zeros((TT, 1), jnp.float32)
        best_noisy_ref[...] = jnp.full((TT, 1), -jnp.inf, jnp.float32)
        best_logit_ref[...] = jnp.full((TT, 1), _PAD_LOGIT, jnp.float32)
        best_idx_ref[...] = jnp.zeros((TT, 1), jnp.int32)
        rank_ref[...] = jnp.zeros((TT, 1), jnp.int32)

    # ------- phase 0: streaming top-K + sum-exp (+ fused Gumbel race) -------
    @pl.when(p == 0)
    def _phase0():
        x, col = load_block()
        old_m = topk_val_ref[:, 0:1]

        # Exact block top-K (first-occurrence tie-break, matches torch.topk).
        # Candidates are written into lanes K..2K-1 of the running scratch so
        # no lane-dim concatenate is needed for the merge.
        work = x
        block_max = None
        for j in range(K):
            bmax = jnp.max(work, axis=-1, keepdims=True)
            bidx = jnp.min(jnp.where(work == bmax, col, _BIG_COL),
                           axis=-1, keepdims=True)
            topk_val_ref[:, K + j:K + j + 1] = bmax
            topk_idx_ref[:, K + j:K + j + 1] = bidx
            if j == 0:
                block_max = bmax
            if j + 1 < K:
                work = jnp.where(col == bidx, -jnp.inf, work)

        # Merge running top-K (lanes 0..K-1) with block candidates (K..2K-1).
        cv = topk_val_ref[...]
        ci = topk_idx_ref[...]
        pos = lax.broadcasted_iota(jnp.int32, (TT, 2 * K), 1)
        for j in range(K):
            mv = jnp.max(cv, axis=-1, keepdims=True)
            mp = jnp.min(jnp.where(cv == mv, pos, 2 * K), axis=-1, keepdims=True)
            mi = jnp.sum(jnp.where(pos == mp, ci, 0), axis=-1, keepdims=True)
            topk_val_ref[:, j:j + 1] = mv
            topk_idx_ref[:, j:j + 1] = mi
            cv = jnp.where(pos == mp, -jnp.inf, cv)

        # Online sum of exp(logit - running_max).
        new_m = jnp.maximum(old_m, block_max)
        sumexp_ref[...] = (sumexp_ref[...] * jnp.exp(old_m - new_m)
                           + jnp.sum(jnp.exp(x - new_m), axis=-1, keepdims=True))

        # Fused Gumbel race when no random row of this tile uses min_p: the
        # common vLLM configuration then needs only 2 passes over the logits.
        @pl.when(race_in_p0)
        def _race0():
            temp = temp_ref[...]
            inv_t = 1.0 / jnp.where(temp < _SAMPLING_EPS, 1.0, temp)
            race_update(x, col, x * inv_t)

    # -------- phase 1: min_p-filtered Gumbel race (only when needed) --------
    @pl.when(jnp.logical_and(p == 1, run_p1))
    def _phase1():
        x, col = load_block()
        temp = temp_ref[...]
        temp_safe = jnp.where(temp < _SAMPLING_EPS, 1.0, temp)
        row_max = topk_val_ref[:, 0:1]
        # min_p as a log-space threshold on the raw logits:
        #   softmax(x/t) >= min_p * max_prob  <=>  x >= row_max + t * log(min_p)
        # (log(0) = -inf keeps everything valid when min_p == 0.)
        thresh = row_max + temp_safe * jnp.log(minp_ref[...])
        scaled = jnp.where(x >= thresh, x * (1.0 / temp_safe), -jnp.inf)
        race_update(x, col, scaled)

    # ---------------- phase 2: rank count + finalize / pack ----------------
    @pl.when(p == 2)
    def _phase2():
        x, _ = load_block()
        temp = temp_ref[...]
        is_greedy = temp < _SAMPLING_EPS
        row_max = topk_val_ref[:, 0:1]
        sampled_logit = jnp.where(is_greedy, row_max, best_logit_ref[...])
        rank_ref[...] = rank_ref[...] + jnp.sum(
            (x >= sampled_logit).astype(jnp.int32), axis=-1, keepdims=True)

        @pl.when(k == last_k)
        def _finalize():
            sampled_idx = jnp.where(is_greedy, topk_idx_ref[:, 0:1],
                                    best_idx_ref[...])
            lse = row_max + jnp.log(sumexp_ref[...])
            out_w = int_out_ref.shape[1]
            int_out_ref[:, 0:1] = sampled_idx
            int_out_ref[:, 1:1 + K] = topk_idx_ref[:, 0:K]
            int_out_ref[:, 1 + K:2 + K] = rank_ref[...]
            fp_out_ref[:, 0:1] = sampled_logit - lse
            fp_out_ref[:, 1:1 + K] = topk_val_ref[:, 0:K] - lse
            if out_w > 2 + K:
                int_out_ref[:, 2 + K:] = jnp.zeros((TT, out_w - (2 + K)), jnp.int32)
            if out_w > 1 + K:
                fp_out_ref[:, 1 + K:] = jnp.zeros((TT, out_w - (1 + K)), jnp.float32)


def sampler_forward(logits, temperature, min_p, seed, *,
                    token_tile=64, vocab_tile=16384):
    """Fused Sampler.forward.

    Args:
      logits:      (T, V) float32 / bfloat16 (streamed in native dtype)
      temperature: (T,)   float32  (< 1e-5, e.g. -1.0, means greedy)
      min_p:       (T,)   float32
      seed:        python int

    Returns:
      sampled_token_ids (T, 1) int32,
      (indices (T, K+1) int32, logprobs (T, K+1) f32, ranks (T,) int32)
      where column 0 is the sampled token (matches vLLM gather_logprobs).
    """
    T, V = logits.shape
    K = NUM_LOGPROBS
    out_w = _round_up(K + 2, 8)

    # --- token tiling (the big logits tensor is NOT copied / padded on host) ---
    row_align = 16 if logits.dtype == jnp.bfloat16 else 8
    tt = _round_up(min(token_tile, _round_up(T, row_align)), row_align)
    if _cdiv(T, tt) == 1 and T > row_align:
        # feed both TensorCores on megacore parts when the batch allows it
        tt = min(tt, _round_up(_cdiv(T, 2), row_align))
    n_tok = _cdiv(T, tt)
    T_pad = n_tok * tt

    tv = _round_up(min(vocab_tile, _round_up(V, 128)), 128)
    n_vocab = _cdiv(V, tv)

    temp_p = jnp.pad(temperature.astype(jnp.float32), (0, T_pad - T))
    minp_p = jnp.pad(min_p.astype(jnp.float32), (0, T_pad - T))

    # per-token-tile flags: bit0 = any random row, bit1 = any random row w/ min_p>0
    is_rand = (temp_p >= _SAMPLING_EPS).reshape(n_tok, tt)
    has_minp = jnp.logical_and(is_rand, (minp_p > 0.0).reshape(n_tok, tt))
    flags = (jnp.any(is_rand, axis=1).astype(jnp.int32)
             | (jnp.any(has_minp, axis=1).astype(jnp.int32) << 1))
    meta = jnp.concatenate([jnp.array([seed], jnp.int32), flags])

    temp_p = temp_p.reshape(T_pad, 1)
    minp_p = minp_p.reshape(T_pad, 1)

    nvb = n_vocab

    def logits_map(i, p, k, meta_ref):
        # When phase 1 is skipped for this token tile (all-greedy, or min_p==0
        # so the race already ran inside phase 0) keep pointing at the block
        # phase 0 finished with, so Pallas elides the phase-1 logits DMAs.
        skip_p1 = (meta_ref[1 + i] & 3) != 3
        kk = jnp.where(jnp.logical_and(p == 1, skip_p1), nvb - 1, k)
        return (i, kk)

    kernel = functools.partial(_sampler_kernel, V, K)
    grid = (n_tok, 3, n_vocab)          # (token tiles, phase, vocab tiles)

    blk_bytes = tt * tv * logits.dtype.itemsize
    vmem_limit = min(100 * 1024 * 1024, max(32 * 1024 * 1024, 3 * blk_bytes))

    int_out, fp_out = pl.pallas_call(
        kernel,
        out_shape=(jax.ShapeDtypeStruct((T_pad, out_w), jnp.int32),
                   jax.ShapeDtypeStruct((T_pad, out_w), jnp.float32)),
        grid_spec=pltpu.PrefetchScalarGridSpec(
            num_scalar_prefetch=1,
            grid=grid,
            in_specs=[
                pl.BlockSpec((tt, tv), logits_map),
                pl.BlockSpec((tt, 1), lambda i, p, k, m: (i, 0)),
                pl.BlockSpec((tt, 1), lambda i, p, k, m: (i, 0)),
            ],
            out_specs=[
                pl.BlockSpec((tt, out_w), lambda i, p, k, m: (i, 0)),
                pl.BlockSpec((tt, out_w), lambda i, p, k, m: (i, 0)),
            ],
            scratch_shapes=[
                pltpu.VMEM((tt, 2 * K), jnp.float32),  # running + candidate top-K vals
                pltpu.VMEM((tt, 2 * K), jnp.int32),    # running + candidate top-K idx
                pltpu.VMEM((tt, 1), jnp.float32),      # running sum-exp
                pltpu.VMEM((tt, 1), jnp.float32),      # best noisy score
                pltpu.VMEM((tt, 1), jnp.float32),      # best noisy raw logit
                pltpu.VMEM((tt, 1), jnp.int32),        # best noisy index
                pltpu.VMEM((tt, 1), jnp.int32),        # rank accumulator
            ]),
        compiler_params=pltpu.CompilerParams(
            dimension_semantics=("parallel", "arbitrary", "arbitrary"),
            vmem_limit_bytes=vmem_limit),
    )(meta, logits, temp_p, minp_p)

    sampled = int_out[:T, 0:1]
    topk_indices = int_out[:T, 0:K + 1]
    ranks = int_out[:T, K + 1]
    topk_logprobs = fp_out[:T, 0:K + 1]
    return sampled, (topk_indices, topk_logprobs, ranks)


def _check(name, logits, temperature, min_p, seed, token_tile, vocab_tile):
    T, V = logits.shape
    K = NUM_LOGPROBS
    sampled, (topk_idx, topk_lp, ranks) = sampler_forward(
        logits, temperature, min_p, seed=seed,
        token_tile=token_tile, vocab_tile=vocab_tile)
    jax.block_until_ready((sampled, topk_idx, topk_lp, ranks))

    logits32 = logits.astype(jnp.float32)
    ref_lp = jax.nn.log_softmax(logits32, axis=-1)
    ref_greedy = jnp.argmax(logits32, axis=-1).astype(jnp.int32)
    greedy_rows = temperature < _SAMPLING_EPS

    assert sampled.shape == (T, 1) and sampled.dtype == jnp.int32, name
    assert bool(jnp.all((sampled[:, 0] >= 0) & (sampled[:, 0] < V))), name
    assert bool(jnp.all(jnp.where(greedy_rows, sampled[:, 0] == ref_greedy, True))), name

    gathered = ref_lp[jnp.arange(T), sampled[:, 0]]
    assert bool(jnp.allclose(topk_lp[:, 0], gathered, atol=1e-4)), name
    assert bool(jnp.all(topk_idx[:, 0] == sampled[:, 0])), name

    ref_vals, ref_idx = jax.lax.top_k(ref_lp, K)
    assert bool(jnp.allclose(topk_lp[:, 1:], ref_vals, atol=1e-4)), name
    assert bool(jnp.all(topk_idx[:, 1:] == ref_idx)), name

    sampled_logit = logits32[jnp.arange(T), sampled[:, 0]][:, None]
    ref_rank = jnp.sum(logits32 >= sampled_logit, axis=-1).astype(jnp.int32)
    assert bool(jnp.all(ranks == ref_rank)), name

    # random rows must satisfy the min_p constraint
    rand_rows = jnp.logical_not(greedy_rows)
    if bool(jnp.any(rand_rows)):
        temp_safe = jnp.where(greedy_rows, 1.0, temperature)
        probs = jax.nn.softmax(logits32 / temp_safe[:, None], axis=-1)
        p_sampled = probs[jnp.arange(T), sampled[:, 0]]
        p_max = jnp.max(probs, axis=-1)
        ok = p_sampled >= min_p * p_max - 1e-6
        assert bool(jnp.all(jnp.where(rand_rows, ok, True))), name


if __name__ == "__main__":
    key = jax.random.PRNGKey(0)
    k1, k2 = jax.random.split(key)
    T = 8

    # Case 1: mixed greedy / random with one min_p row -> full 3-phase path.
    logits1 = jax.random.normal(k1, (T, 256), dtype=jnp.float32) * 3.0
    temp1 = jnp.array([-1.0, -1.0, -1.0, -1.0, 0.7, 0.7, 0.7, 0.7], jnp.float32)
    minp1 = jnp.array([0.0, 0.0, 0.0, 0.0, 0.0, 0.05, 0.0, 0.0], jnp.float32)
    _check("mixed+minp", logits1, temp1, minp1, 1234, 8, 128)

    # Case 2: random rows, min_p == 0 everywhere, vocab NOT a multiple of the
    # tile -> fused 2-pass path + in-kernel vocab-tail masking.
    logits2 = jax.random.normal(k2, (T, 200), dtype=jnp.float32) * 3.0
    temp2 = jnp.array([-1.0, 0.8, 0.5, 1.0, -1.0, 0.9, 1.3, 0.6], jnp.float32)
    minp2 = jnp.zeros((T,), jnp.float32)
    _check("fused-race", logits2, temp2, minp2, 7, 8, 128)

    # Case 3: all-greedy batch -> phase-1 compute and DMA fully elided.
    temp3 = jnp.full((T,), -1.0, jnp.float32)
    _check("all-greedy", logits1, temp3, jnp.zeros((T,), jnp.float32), 0, 8, 128)

    print("KERNEL_OK")
</pallas_src>

<mosaic_0001>
module attributes {stable_mosaic.version = 11 : i64} {
  func.func @_sampler_kernel(%arg0: i32, %arg1: i32, %arg2: i32, %arg3: memref<2xi32, #tpu.memory_space<smem>>, %arg4: memref<8x128xf32, #tpu.memory_space<vmem>>, %arg5: memref<8x1xf32, #tpu.memory_space<vmem>>, %arg6: memref<8x1xf32, #tpu.memory_space<vmem>>, %arg7: memref<8x8xi32, #tpu.memory_space<vmem>>, %arg8: memref<8x8xf32, #tpu.memory_space<vmem>>, %arg9: memref<8x8xf32, #tpu.memory_space<vmem>>, %arg10: memref<8x8xi32, #tpu.memory_space<vmem>>, %arg11: memref<8x1xf32, #tpu.memory_space<vmem>>, %arg12: memref<8x1xf32, #tpu.memory_space<vmem>>, %arg13: memref<8x1xf32, #tpu.memory_space<vmem>>, %arg14: memref<8x1xi32, #tpu.memory_space<vmem>>, %arg15: memref<8x1xi32, #tpu.memory_space<vmem>>) attributes {dimension_semantics = [#tpu.dimension_semantics<parallel>, #tpu.dimension_semantics<arbitrary>, #tpu.dimension_semantics<arbitrary>], iteration_bounds = array<i64: 1, 3, 2>, scalar_prefetch = 1 : i64, scratch_operands = 7 : i64, tpu.core_type = #tpu.core_type<tc>, window_params = [{transform_indices = @transform_0, window_bounds = array<i64: 8, 128>}, {transform_indices = @transform_1, window_bounds = array<i64: 8, 1>}, {transform_indices = @transform_2, window_bounds = array<i64: 8, 1>}, {transform_indices = @transform_3, window_bounds = array<i64: 8, 8>}, {transform_indices = @transform_4, window_bounds = array<i64: 8, 8>}]} {
    %c1_i32 = arith.constant 1 : i32
    %0 = arith.addi %c1_i32, %arg0 : i32
    %1 = arith.index_cast %0 : i32 to index
    %2 = memref.load %arg3[%1] : memref<2xi32, #tpu.memory_space<smem>>
    %c1_i32_0 = arith.constant 1 : i32
    %3 = arith.andi %2, %c1_i32_0 : i32
    %c0_i32 = arith.constant 0 : i32
    %4 = arith.cmpi ne, %3, %c0_i32 : i32
    %c2_i32 = arith.constant 2 : i32
    %5 = arith.andi %2, %c2_i32 : i32
    %c0_i32_1 = arith.constant 0 : i32
    %6 = arith.cmpi ne, %5, %c0_i32_1 : i32
    %true = arith.constant true
    %7 = arith.xori %6, %true : i1
    %8 = arith.andi %4, %7 : i1
    %9 = arith.andi %4, %6 : i1
    %c0_i32_2 = arith.constant 0 : i32
    %10 = arith.cmpi eq, %arg1, %c0_i32_2 : i32
    %c0_i32_3 = arith.constant 0 : i32
    %11 = arith.cmpi eq, %arg2, %c0_i32_3 : i32
    %12 = arith.andi %10, %11 : i1
    %13 = arith.extui %12 : i1 to i32
    %c0_i32_4 = arith.constant 0 : i32
    %14 = arith.cmpi ne, %13, %c0_i32_4 : i32
    scf.if %14 {
      %cst = arith.constant 0xFF800000 : f32
      %25 = vector.broadcast %cst : f32 to vector<8x8xf32>
      %c0 = arith.constant 0 : index
      %c0_11 = arith.constant 0 : index
      %26 = vector.load %arg9[%c0, %c0_11] : memref<8x8xf32, #tpu.memory_space<vmem>>, vector<8x8xf32>
      tpu.vector_store %arg9[%c0, %c0_11], %25 {strides = array<i32>} : memref<8x8xf32, #tpu.memory_space<vmem>>, vector<8x8xf32>,
      %c0_i32_12 = arith.constant 0 : i32
      %27 = vector.broadcast %c0_i32_12 : i32 to vector<8x8xi32>
      %c0_13 = arith.constant 0 : index
      %c0_14 = arith.constant 0 : index
      %28 = vector.load %arg10[%c0_13, %c0_14] : memref<8x8xi32, #tpu.memory_space<vmem>>, vector<8x8xi32>
      tpu.vector_store %arg10[%c0_13, %c0_14], %27 {strides = array<i32>} : memref<8x8xi32, #tpu.memory_space<vmem>>, vector<8x8xi32>,
      %cst_15 = arith.constant 0.000000e+00 : f32
      %29 = vector.broadcast %cst_15 : f32 to vector<8x1xf32>
      %c0_16 = arith.constant 0 : index
      %c0_17 = arith.constant 0 : index
      %30 = vector.load %arg11[%c0_16, %c0_17] : memref<8x1xf32, #tpu.memory_space<vmem>>, vector<8x1xf32>
      tpu.vector_store %arg11[%c0_16, %c0_17], %29 {strides = array<i32>} : memref<8x1xf32, #tpu.memory_space<vmem>>, vector<8x1xf32>,
      %cst_18 = arith.constant 0xFF800000 : f32
      %31 = vector.broadcast %cst_18 : f32 to vector<8x1xf32>
      %c0_19 = arith.constant 0 : index
      %c0_20 = arith.constant 0 : index
      %32 = vector.load %arg12[%c0_19, %c0_20] : memref<8x1xf32, #tpu.memory_space<vmem>>, vector<8x1xf32>
      tpu.vector_store %arg12[%c0_19, %c0_20], %31 {strides = array<i32>} : memref<8x1xf32, #tpu.memory_space<vmem>>, vector<8x1xf32>,
      %cst_21 = arith.constant -1.000000e+30 : f32
      %33 = vector.broadcast %cst_21 : f32 to vector<8x1xf32>
      %c0_22 = arith.constant 0 : index
      %c0_23 = arith.constant 0 : index
      %34 = vector.load %arg13[%c0_22, %c0_23] : memref<8x1xf32, #tpu.memory_space<vmem>>, vector<8x1xf32>
      tpu.vector_store %arg13[%c0_22, %c0_23], %33 {strides = array<i32>} : memref<8x1xf32, #tpu.memory_space<vmem>>, vector<8x1xf32>,
      %c0_i32_24 = arith.constant 0 : i32
      %35 = vector.broadcast %c0_i32_24 : i32 to vector<8x1xi32>
      %c0_25 = arith.constant 0 : index
      %c0_26 = arith.constant 0 : index
      %36 = vector.load %arg14[%c0_25, %c0_26] : memref<8x1xi32, #tpu.memory_space<vmem>>, vector<8x1xi32>
      tpu.vector_store %arg14[%c0_25, %c0_26], %35 {strides = array<i32>} : memref<8x1xi32, #tpu.memory_space<vmem>>, vector<8x1xi32>,
      %c0_i32_27 = arith.constant 0 : i32
      %37 = vector.broadcast %c0_i32_27 : i32 to vector<8x1xi32>
      %c0_28 = arith.constant 0 : index
      %c0_29 = arith.constant 0 : index
      %38 = vector.load %arg15[%c0_28, %c0_29] : memref<8x1xi32, #tpu.memory_space<vmem>>, vector<8x1xi32>
      tpu.vector_store %arg15[%c0_28, %c0_29], %37 {strides = array<i32>} : memref<8x1xi32, #tpu.memory_space<vmem>>, vector<8x1xi32>,
    } else {
    }
    %c0_i32_5 = arith.constant 0 : i32
    %15 = arith.cmpi eq, %arg1, %c0_i32_5 : i32
    %16 = arith.extui %15 : i1 to i32
    %c0_i32_6 = arith.constant 0 : i32
    %17 = arith.cmpi ne, %16, %c0_i32_6 : i32
    scf.if %17 {
      %c0 = arith.constant 0 : index
      %c0_11 = arith.constant 0 : index
      %25 = vector.load %arg4[%c0, %c0_11] : memref<8x128xf32, #tpu.memory_space<vmem>>, vector<8x128xf32>
      %26 = tpu.iota {dimensions = array<i32: 1>} : vector<8x128xi32>
      %c128_i32 = arith.constant 128 : i32
      %27 = arith.muli %arg2, %c128_i32 : i32
      %28 = vector.broadcast %27 : i32 to vector<8x128xi32>
      %29 = arith.addi %26, %28 : vector<8x128xi32>
      %c0_12 = arith.constant 0 : index
      %c0_13 = arith.constant 0 : index
      %30 = vector.load %arg9[%c0_12, %c0_13] : memref<8x8xf32, #tpu.memory_space<vmem>>, vector<8x1xf32>
      %cst = arith.constant dense<0xFF800000> : vector<8xf32>
      %31 = vector.multi_reduction <maximumf>, %25, %cst [1] : vector<8x128xf32> to vector<8xf32>
      %32 = vector.shape_cast %31 : vector<8xf32> to vector<8x1xf32>
      %33 = vector.broadcast %32 : vector<8x1xf32> to vector<8x128xf32>
      %34 = arith.cmpf oeq, %25, %33 : vector<8x128xf32>
      %c1073741824_i32 = arith.constant 1073741824 : i32
      %35 = vector.broadcast %c1073741824_i32 : i32 to vector<8x128xi32>
      %36 = arith.select %34, %29, %35 : vector<8x128xi1>, vector<8x128xi32>
      %cst_14 = arith.constant dense<2147483647> : vector<8xi32>
      %37 = vector.multi_reduction <minsi>, %36, %cst_14 [1] : vector<8x128xi32> to vector<8xi32>
      %38 = vector.shape_cast %37 : vector<8xi32> to vector<8x1xi32>
      %c0_15 = arith.constant 0 : index
      %c4 = arith.constant 4 : index
      %39 = vector.load %arg9[%c0_15, %c4] : memref<8x8xf32, #tpu.memory_space<vmem>>, vector<8x1xf32>
      tpu.vector_store %arg9[%c0_15, %c4], %32 {strides = array<i32>} : memref<8x8xf32, #tpu.memory_space<vmem>>, vector<8x1xf32>,
      %c0_16 = arith.constant 0 : index
      %c4_17 = arith.constant 4 : index
      %40 = vector.load %arg10[%c0_16, %c4_17] : memref<8x8xi32, #tpu.memory_space<vmem>>, vector<8x1xi32>
      tpu.vector_store %arg10[%c0_16, %c4_17], %38 {strides = array<i32>} : memref<8x8xi32, #tpu.memory_space<vmem>>, vector<8x1xi32>,
      %41 = vector.broadcast %38 : vector<8x1xi32> to vector<8x128xi32>
      %42 = arith.cmpi eq, %29, %41 : vector<8x128xi32>
      %cst_18 = arith.constant 0xFF800000 : f32
      %43 = vector.broadcast %cst_18 : f32 to vector<8x128xf32>
      %44 = arith.select %42, %43, %25 : vector<8x128xi1>, vector<8x128xf32>
      %cst_19 = arith.constant dense<0xFF800000> : vector<8xf32>
      %45 = vector.multi_reduction <maximumf>, %44, %cst_19 [1] : vector<8x128xf32> to vector<8xf32>
      %46 = vector.shape_cast %45 : vector<8xf32> to vector<8x1xf32>
      %47 = vector.broadcast %46 : vector<8x1xf32> to vector<8x128xf32>
      %48 = arith.cmpf oeq, %44, %47 : vector<8x128xf32>
      %c1073741824_i32_20 = arith.constant 1073741824 : i32
      %49 = vector.broadcast %c1073741824_i32_20 : i32 to vector<8x128xi32>
      %50 = arith.select %48, %29, %49 : vector<8x128xi1>, vector<8x128xi32>
      %cst_21 = arith.constant dense<2147483647> : vector<8xi32>
      %51 = vector.multi_reduction <minsi>, %50, %cst_21 [1] : vector<8x128xi32> to vector<8xi32>
      %52 = vector.shape_cast %51 : vector<8xi32> to vector<8x1xi32>
      %c0_22 = arith.constant 0 : index
      %c5 = arith.constant 5 : index
      %53 = vector.load %arg9[%c0_22, %c5] : memref<8x8xf32, #tpu.memory_space<vmem>>, vector<8x1xf32>
      tpu.vector_store %arg9[%c0_22, %c5], %46 {strides = array<i32>} : memref<8x8xf32, #tpu.memory_space<vmem>>, vector<8x1xf32>,
      %c0_23 = arith.constant 0 : index
      %c5_24 = arith.constant 5 : index
      %54 = vector.load %arg10[%c0_23, %c5_24] : memref<8x8xi32, #tpu.memory_space<vmem>>, vector<8x1xi32>
      tpu.vector_store %arg10[%c0_23, %c5_24], %52 {strides = array<i32>} : memref<8x8xi32, #tpu.memory_space<vmem>>, vector<8x1xi32>,
      %55 = vector.broadcast %52 : vector<8x1xi32> to vector<8x128xi32>
      %56 = arith.cmpi eq, %29, %55 : vector<8x128xi32>
      %cst_25 = arith.constant 0xFF800000 : f32
      %57 = vector.broadcast %cst_25 : f32 to vector<8x128xf32>
      %58 = arith.select %56, %57, %44 : vector<8x128xi1>, vector<8x128xf32>
      %cst_26 = arith.constant dense<0xFF800000> : vector<8xf32>
      %59 = vector.multi_reduction <maximumf>, %58, %cst_26 [1] : vector<8x128xf32> to vector<8xf32>
      %60 = vector.shape_cast %59 : vector<8xf32> to vector<8x1xf32>
      %61 = vector.broadcast %60 : vector<8x1xf32> to vector<8x128xf32>
      %62 = arith.cmpf oeq, %58, %61 : vector<8x128xf32>
      %c1073741824_i32_27 = arith.constant 1073741824 : i32
      %63 = vector.broadcast %c1073741824_i32_27 : i32 to vector<8x128xi32>
      %64 = arith.select %62, %29, %63 : vector<8x128xi1>, vector<8x128xi32>
      %cst_28 = arith.constant dense<2147483647> : vector<8xi32>
      %65 = vector.multi_reduction <minsi>, %64, %cst_28 [1] : vector<8x128xi32> to vector<8xi32>
      %66 = vector.shape_cast %65 : vector<8xi32> to vector<8x1xi32>
      %c0_29 = arith.constant 0 : index
      %c6 = arith.constant 6 : index
      %67 = vector.load %arg9[%c0_29, %c6] : memref<8x8xf32, #tpu.memory_space<vmem>>, vector<8x1xf32>
      tpu.vector_store %arg9[%c0_29, %c6], %60 {strides = array<i32>} : memref<8x8xf32, #tpu.memory_space<vmem>>, vector<8x1xf32>,
      %c0_30 = arith.constant 0 : index
      %c6_31 = arith.constant 6 : index
      %68 = vector.load %arg10[%c0_30, %c6_31] : memref<8x8xi32, #tpu.memory_space<vmem>>, vector<8x1xi32>
      tpu.vector_store %arg10[%c0_30, %c6_31], %66 {strides = array<i32>} : memref<8x8xi32, #tpu.memory_space<vmem>>, vector<8x1xi32>,
      %69 = vector.broadcast %66 : vector<8x1xi32> to vector<8x128xi32>
      %70 = arith.cmpi eq, %29, %69 : vector<8x128xi32>
      %cst_32 = arith.constant 0xFF800000 : f32
      %71 = vector.broadcast %cst_32 : f32 to vector<8x128xf32>
      %72 = arith.select %70, %71, %58 : vector<8x128xi1>, vector<8x128xf32>
      %cst_33 = arith.constant dense<0xFF800000> : vector<8xf32>
      %73 = vector.multi_reduction <maximumf>, %72, %cst_33 [1] : vector<8x128xf32> to vector<8xf32>
      %74 = vector.shape_cast %73 : vector<8xf32> to vector<8x1xf32>
      %75 = vector.broadcast %74 : vector<8x1xf32> to vector<8x128xf32>
      %76 = arith.cmpf oeq, %72, %75 : vector<8x128xf32>
      %c1073741824_i32_34 = arith.constant 1073741824 : i32
      %77 = vector.broadcast %c1073741824_i32_34 : i32 to vector<8x128xi32>
      %78 = arith.select %76, %29, %77 : vector<8x128xi1>, vector<8x128xi32>
      %cst_35 = arith.constant dense<2147483647> : vector<8xi32>
      %79 = vector.multi_reduction <minsi>, %78, %cst_35 [1] : vector<8x128xi32> to vector<8xi32>
      %80 = vector.shape_cast %79 : vector<8xi32> to vector<8x1xi32>
      %c0_36 = arith.constant 0 : index
      %c7 = arith.constant 7 : index
      %81 = vector.load %arg9[%c0_36, %c7] : memref<8x8xf32, #tpu.memory_space<vmem>>, vector<8x1xf32>
      tpu.vector_store %arg9[%c0_36, %c7], %74 {strides = array<i32>} : memref<8x8xf32, #tpu.memory_space<vmem>>, vector<8x1xf32>,
      %c0_37 = arith.constant 0 : index
      %c7_38 = arith.constant 7 : index
      %82 = vector.load %arg10[%c0_37, %c7_38] : memref<8x8xi32, #tpu.memory_space<vmem>>, vector<8x1xi32>
      tpu.vector_store %arg10[%c0_37, %c7_38], %80 {strides = array<i32>} : memref<8x8xi32, #tpu.memory_space<vmem>>, vector<8x1xi32>,
      %c0_39 = arith.constant 0 : index
      %c0_40 = arith.constant 0 : index
      %83 = vector.load %arg9[%c0_39, %c0_40] : memref<8x8xf32, #tpu.memory_space<vmem>>, vector<8x8xf32>
      %c0_41 = arith.constant 0 : index
      %c0_42 = arith.constant 0 : index
      %84 = vector.load %arg10[%c0_41, %c0_42] : memref<8x8xi32, #tpu.memory_space<vmem>>, vector<8x8xi32>
      %85 = tpu.iota {dimensions = array<i32: 1>} : vector<8x8xi32>
      %cst_43 = arith.constant dense<0xFF800000> : vector<8xf32>
      %86 = vector.multi_reduction <maximumf>, %83, %cst_43 [1] : vector<8x8xf32> to vector<8xf32>
      %87 = vector.shape_cast %86 : vector<8xf32> to vector<8x1xf32>
      %88 = vector.broadcast %87 : vector<8x1xf32> to vector<8x8xf32>
      %89 = arith.cmpf oeq, %83, %88 : vector<8x8xf32>
      %c8_i32 = arith.constant 8 : i32
      %90 = vector.broadcast %c8_i32 : i32 to vector<8x8xi32>
      %91 = arith.select %89, %85, %90 : vector<8x8xi1>, vector<8x8xi32>
      %cst_44 = arith.constant dense<2147483647> : vector<8xi32>
      %92 = vector.multi_reduction <minsi>, %91, %cst_44 [1] : vector<8x8xi32> to vector<8xi32>
      %93 = vector.shape_cast %92 : vector<8xi32> to vector<8x1xi32>
      %94 = vector.broadcast %93 : vector<8x1xi32> to vector<8x8xi32>
      %95 = arith.cmpi eq, %85, %94 : vector<8x8xi32>
      %c0_i32_45 = arith.constant 0 : i32
      %96 = vector.broadcast %c0_i32_45 : i32 to vector<8x8xi32>
      %97 = arith.select %95, %84, %96 : vector<8x8xi1>, vector<8x8xi32>
      %cst_46 = arith.constant dense<0> : vector<8xi32>
      %98 = vector.multi_reduction <add>, %97, %cst_46 [1] : vector<8x8xi32> to vector<8xi32>
      %99 = vector.shape_cast %98 : vector<8xi32> to vector<8x1xi32>
      %c0_47 = arith.constant 0 : index
      %c0_48 = arith.constant 0 : index
      %100 = vector.load %arg9[%c0_47, %c0_48] : memref<8x8xf32, #tpu.memory_space<vmem>>, vector<8x1xf32>
      tpu.vector_store %arg9[%c0_47, %c0_48], %87 {strides = array<i32>} : memref<8x8xf32, #tpu.memory_space<vmem>>, vector<8x1xf32>,
      %c0_49 = arith.constant 0 : index
      %c0_50 = arith.constant 0 : index
      %101 = vector.load %arg10[%c0_49, %c0_50] : memref<8x8xi32, #tpu.memory_space<vmem>>, vector<8x1xi32>
      tpu.vector_store %arg10[%c0_49, %c0_50], %99 {strides = array<i32>} : memref<8x8xi32, #tpu.memory_space<vmem>>, vector<8x1xi32>,
      %102 = vector.broadcast %93 : vector<8x1xi32> to vector<8x8xi32>
      %103 = arith.cmpi eq, %85, %102 : vector<8x8xi32>
      %cst_51 = arith.constant 0xFF800000 : f32
      %104 = vector.broadcast %cst_51 : f32 to vector<8x8xf32>
      %105 = arith.select %103, %104, %83 : vector<8x8xi1>, vector<8x8xf32>
      %cst_52 = arith.constant dense<0xFF800000> : vector<8xf32>
      %106 = vector.multi_reduction <maximumf>, %105, %cst_52 [1] : vector<8x8xf32> to vector<8xf32>
      %107 = vector.shape_cast %106 : vector<8xf32> to vector<8x1xf32>
      %108 = vector.broadcast %107 : vector<8x1xf32> to vector<8x8xf32>
      %109 = arith.cmpf oeq, %105, %108 : vector<8x8xf32>
      %c8_i32_53 = arith.constant 8 : i32
      %110 = vector.broadcast %c8_i32_53 : i32 to vector<8x8xi32>
      %111 = arith.select %109, %85, %110 : vector<8x8xi1>, vector<8x8xi32>
      %cst_54 = arith.constant dense<2147483647> : vector<8xi32>
      %112 = vector.multi_reduction <minsi>, %111, %cst_54 [1] : vector<8x8xi32> to vector<8xi32>
      %113 = vector.shape_cast %112 : vector<8xi32> to vector<8x1xi32>
      %114 = vector.broadcast %113 : vector<8x1xi32> to vector<8x8xi32>
      %115 = arith.cmpi eq, %85, %114 : vector<8x8xi32>
      %c0_i32_55 = arith.constant 0 : i32
      %116 = vector.broadcast %c0_i32_55 : i32 to vector<8x8xi32>
      %117 = arith.select %115, %84, %116 : vector<8x8xi1>, vector<8x8xi32>
      %cst_56 = arith.constant dense<0> : vector<8xi32>
      %118 = vector.multi_reduction <add>, %117, %cst_56 [1] : vector<8x8xi32> to vector<8xi32>
      %119 = vector.shape_cast %118 : vector<8xi32> to vector<8x1xi32>
      %c0_57 = arith.constant 0 : index
      %c1 = arith.constant 1 : index
      %120 = vector.load %arg9[%c0_57, %c1] : memref<8x8xf32, #tpu.memory_space<vmem>>, vector<8x1xf32>
      tpu.vector_store %arg9[%c0_57, %c1], %107 {strides = array<i32>} : memref<8x8xf32, #tpu.memory_space<vmem>>, vector<8x1xf32>,
      %c0_58 = arith.constant 0 : index
      %c1_59 = arith.constant 1 : index
      %121 = vector.load %arg10[%c0_58, %c1_59] : memref<8x8xi32, #tpu.memory_space<vmem>>, vector<8x1xi32>
      tpu.vector_store %arg10[%c0_58, %c1_59], %119 {strides = array<i32>} : memref<8x8xi32, #tpu.memory_space<vmem>>, vector<8x1xi32>,
      %122 = vector.broadcast %113 : vector<8x1xi32> to vector<8x8xi32>
      %123 = arith.cmpi eq, %85, %122 : vector<8x8xi32>
      %cst_60 = arith.constant 0xFF800000 : f32
      %124 = vector.broadcast %cst_60 : f32 to vector<8x8xf32>
      %125 = arith.select %123, %124, %105 : vector<8x8xi1>, vector<8x8xf32>
      %cst_61 = arith.constant dense<0xFF800000> : vector<8xf32>
      %126 = vector.multi_reduction <maximumf>, %125, %cst_61 [1] : vector<8x8xf32> to vector<8xf32>
      %127 = vector.shape_cast %126 : vector<8xf32> to vector<8x1xf32>
      %128 = vector.broadcast %127 : vector<8x1xf32> to vector<8x8xf32>
      %129 = arith.cmpf oeq, %125, %128 : vector<8x8xf32>
      %c8_i32_62 = arith.constant 8 : i32
      %130 = vector.broadcast %c8_i32_62 : i32 to vector<8x8xi32>
      %131 = arith.select %129, %85, %130 : vector<8x8xi1>, vector<8x8xi32>
      %cst_63 = arith.constant dense<2147483647> : vector<8xi32>
      %132 = vector.multi_reduction <minsi>, %131, %cst_63 [1] : vector<8x8xi32> to vector<8xi32>
      %133 = vector.shape_cast %132 : vector<8xi32> to vector<8x1xi32>
      %134 = vector.broadcast %133 : vector<8x1xi32> to vector<8x8xi32>
      %135 = arith.cmpi eq, %85, %134 : vector<8x8xi32>
      %c0_i32_64 = arith.constant 0 : i32
      %136 = vector.broadcast %c0_i32_64 : i32 to vector<8x8xi32>
      %137 = arith.select %135, %84, %136 : vector<8x8xi1>, vector<8x8xi32>
      %cst_65 = arith.constant dense<0> : vector<8xi32>
      %138 = vector.multi_reduction <add>, %137, %cst_65 [1] : vector<8x8xi32> to vector<8xi32>
      %139 = vector.shape_cast %138 : vector<8xi32> to vector<8x1xi32>
      %c0_66 = arith.constant 0 : index
      %c2 = arith.constant 2 : index
      %140 = vector.load %arg9[%c0_66, %c2] : memref<8x8xf32, #tpu.memory_space<vmem>>, vector<8x1xf32>
      tpu.vector_store %arg9[%c0_66, %c2], %127 {strides = array<i32>} : memref<8x8xf32, #tpu.memory_space<vmem>>, vector<8x1xf32>,
      %c0_67 = arith.constant 0 : index
      %c2_68 = arith.constant 2 : index
      %141 = vector.load %arg10[%c0_67, %c2_68] : memref<8x8xi32, #tpu.memory_space<vmem>>, vector<8x1xi32>
      tpu.vector_store %arg10[%c0_67, %c2_68], %139 {strides = array<i32>} : memref<8x8xi32, #tpu.memory_space<vmem>>, vector<8x1xi32>,
      %142 = vector.broadcast %133 : vector<8x1xi32> to vector<8x8xi32>
      %143 = arith.cmpi eq, %85, %142 : vector<8x8xi32>
      %cst_69 = arith.constant 0xFF800000 : f32
      %144 = vector.broadcast %cst_69 : f32 to vector<8x8xf32>
      %145 = arith.select %143, %144, %125 : vector<8x8xi1>, vector<8x8xf32>
      %cst_70 = arith.constant dense<0xFF800000> : vector<8xf32>
      %146 = vector.multi_reduction <maximumf>, %145, %cst_70 [1] : vector<8x8xf32> to vector<8xf32>
      %147 = vector.shape_cast %146 : vector<8xf32> to vector<8x1xf32>
      %148 = vector.broadcast %147 : vector<8x1xf32> to vector<8x8xf32>
      %149 = arith.cmpf oeq, %145, %148 : vector<8x8xf32>
      %c8_i32_71 = arith.constant 8 : i32
      %150 = vector.broadcast %c8_i32_71 : i32 to vector<8x8xi32>
      %151 = arith.select %149, %85, %150 : vector<8x8xi1>, vector<8x8xi32>
      %cst_72 = arith.constant dense<2147483647> : vector<8xi32>
      %152 = vector.multi_reduction <minsi>, %151, %cst_72 [1] : vector<8x8xi32> to vector<8xi32>
      %153 = vector.shape_cast %152 : vector<8xi32> to vector<8x1xi32>
      %154 = vector.broadcast %153 : vector<8x1xi32> to vector<8x8xi32>
      %155 = arith.cmpi eq, %85, %154 : vector<8x8xi32>
      %c0_i32_73 = arith.constant 0 : i32
      %156 = vector.broadcast %c0_i32_73 : i32 to vector<8x8xi32>
      %157 = arith.select %155, %84, %156 : vector<8x8xi1>, vector<8x8xi32>
      %cst_74 = arith.constant dense<0> : vector<8xi32>
      %158 = vector.multi_reduction <add>, %157, %cst_74 [1] : vector<8x8xi32> to vector<8xi32>
      %159 = vector.shape_cast %158 : vector<8xi32> to vector<8x1xi32>
      %c0_75 = arith.constant 0 : index
      %c3 = arith.constant 3 : index
      %160 = vector.load %arg9[%c0_75, %c3] : memref<8x8xf32, #tpu.memory_space<vmem>>, vector<8x1xf32>
      tpu.vector_store %arg9[%c0_75, %c3], %147 {strides = array<i32>} : memref<8x8xf32, #tpu.memory_space<vmem>>, vector<8x1xf32>,
      %c0_76 = arith.constant 0 : index
      %c3_77 = arith.constant 3 : index
      %161 = vector.load %arg10[%c0_76, %c3_77] : memref<8x8xi32, #tpu.memory_space<vmem>>, vector<8x1xi32>
      tpu.vector_store %arg10[%c0_76, %c3_77], %159 {strides = array<i32>} : memref<8x8xi32, #tpu.memory_space<vmem>>, vector<8x1xi32>,
      %162 = arith.maximumf %30, %32 : vector<8x1xf32>
      %c0_78 = arith.constant 0 : index
      %c0_79 = arith.constant 0 : index
      %163 = vector.load %arg11[%c0_78, %c0_79] : memref<8x1xf32, #tpu.memory_space<vmem>>, vector<8x1xf32>
      %164 = arith.subf %30, %162 : vector<8x1xf32>
      %165 = math.exp %164 : vector<8x1xf32>
      %166 = arith.mulf %163, %165 : vector<8x1xf32>
      %167 = vector.broadcast %162 : vector<8x1xf32> to vector<8x128xf32>
      %168 = arith.subf %25, %167 : vector<8x128xf32>
      %169 = math.exp %168 : vector<8x128xf32>
      %cst_80 = arith.constant dense<0.000000e+00> : vector<8xf32>
      %170 = vector.multi_reduction <add>, %169, %cst_80 [1] : vector<8x128xf32> to vector<8xf32>
      %171 = vector.shape_cast %170 : vector<8xf32> to vector<8x1xf32>
      %172 = arith.addf %166, %171 : vector<8x1xf32>
      %c0_81 = arith.constant 0 : index
      %c0_82 = arith.constant 0 : index
      %173 = vector.load %arg11[%c0_81, %c0_82] : memref<8x1xf32, #tpu.memory_space<vmem>>, vector<8x1xf32>
      tpu.vector_store %arg11[%c0_81, %c0_82], %172 {strides = array<i32>} : memref<8x1xf32, #tpu.memory_space<vmem>>, vector<8x1xf32>,
      %174 = arith.extui %8 : i1 to i32
      %c0_i32_83 = arith.constant 0 : i32
      %175 = arith.cmpi ne, %174, %c0_i32_83 : i32
      scf.if %175 {
        %c0_84 = arith.constant 0 : index
        %c0_85 = arith.constant 0 : index
        %176 = vector.load %arg5[%c0_84, %c0_85] : memref<8x1xf32, #tpu.memory_space<vmem>>, vector<8x1xf32>
        %cst_86 = arith.constant 9.99999974E-6 : f32
        %177 = vector.broadcast %cst_86 : f32 to vector<8x1xf32>
        %178 = arith.cmpf olt, %176, %177 : vector<8x1xf32>
        %cst_87 = arith.constant 1.000000e+00 : f32
        %179 = vector.broadcast %cst_87 : f32 to vector<8x1xf32>
        %180 = arith.select %178, %179, %176 : vector<8x1xi1>, vector<8x1xf32>
        %cst_88 = arith.constant 1.000000e+00 : f32
        %181 = vector.broadcast %cst_88 : f32 to vector<8x1xf32>
        %182 = arith.divf %181, %180 : vector<8x1xf32>
        %183 = vector.broadcast %182 : vector<8x1xf32> to vector<8x128xf32>
        %184 = arith.mulf %25, %183 : vector<8x128xf32>
        %c0_89 = arith.constant 0 : index
        %185 = memref.load %arg3[%c0_89] : memref<2xi32, #tpu.memory_space<smem>>
        %c8_i32_90 = arith.constant 8 : i32
        %186 = arith.muli %arg0, %c8_i32_90 : i32
        %187 = tpu.iota {dimensions = array<i32: 0>} : vector<8x128xi32>
        %188 = vector.broadcast %186 : i32 to vector<8x128xi32>
        %189 = arith.addi %187, %188 : vector<8x128xi32>
        %c-1640531535_i32 = arith.constant -1640531535 : i32
        %190 = vector.broadcast %c-1640531535_i32 : i32 to vector<8x128xi32>
        %191 = arith.muli %189, %190 : vector<8x128xi32>
        %c-2048144789_i32 = arith.constant -2048144789 : i32
        %192 = vector.broadcast %c-2048144789_i32 : i32 to vector<8x128xi32>
        %193 = arith.muli %29, %192 : vector<8x128xi32>
        %194 = arith.addi %191, %193 : vector<8x128xi32>
        %195 = vector.broadcast %185 : i32 to vector<8x128xi32>
        %196 = arith.xori %194, %195 : vector<8x128xi32>
        %c15_i32 = arith.constant 15 : i32
        %197 = vector.broadcast %c15_i32 : i32 to vector<8x128xi32>
        %198 = arith.shrui %196, %197 : vector<8x128xi32>
        %199 = arith.xori %196, %198 : vector<8x128xi32>
        %c-1028477387_i32 = arith.constant -1028477387 : i32
        %200 = vector.broadcast %c-1028477387_i32 : i32 to vector<8x128xi32>
        %201 = arith.muli %199, %200 : vector<8x128xi32>
        %c13_i32 = arith.constant 13 : i32
        %202 = vector.broadcast %c13_i32 : i32 to vector<8x128xi32>
        %203 = arith.shrui %201, %202 : vector<8x128xi32>
        %204 = arith.xori %201, %203 : vector<8x128xi32>
        %c9_i32 = arith.constant 9 : i32
        %205 = vector.broadcast %c9_i32 : i32 to vector<8x128xi32>
        %206 = arith.shrui %204, %205 : vector<8x128xi32>
        %c1065353216_i32 = arith.constant 1065353216 : i32
        %207 = vector.broadcast %c1065353216_i32 : i32 to vector<8x128xi32>
        %208 = arith.ori %206, %207 : vector<8x128xi32>
        %209 = tpu.bitcast %208 : vector<8x128xi32> -> vector<8x128xf32>
        %cst_91 = arith.constant 1.000000e+00 : f32
        %210 = vector.broadcast %cst_91 : f32 to vector<8x128xf32>
        %211 = arith.subf %209, %210 : vector<8x128xf32>
        %cst_92 = arith.constant 2.98023224E-8 : f32
        %212 = vector.broadcast %cst_92 : f32 to vector<8x128xf32>
        %213 = arith.addf %211, %212 : vector<8x128xf32>
        %214 = math.log %213 : vector<8x128xf32>
        %cst_93 = arith.constant 0.000000e+00 : f32
        %215 = vector.broadcast %cst_93 : f32 to vector<8x128xf32>
        %216 = arith.subf %215, %214 : vector<8x128xf32>
        %217 = math.log %216 : vector<8x128xf32>
        %cst_94 = arith.constant 0.000000e+00 : f32
        %218 = vector.broadcast %cst_94 : f32 to vector<8x128xf32>
        %219 = arith.subf %218, %217 : vector<8x128xf32>
        %220 = arith.addf %184, %219 : vector<8x128xf32>
        %cst_95 = arith.constant dense<0xFF800000> : vector<8xf32>
        %221 = vector.multi_reduction <maximumf>, %220, %cst_95 [1] : vector<8x128xf32> to vector<8xf32>
        %222 = vector.shape_cast %221 : vector<8xf32> to vector<8x1xf32>
        %223 = vector.broadcast %222 : vector<8x1xf32> to vector<8x128xf32>
        %224 = arith.cmpf oeq, %220, %223 : vector<8x128xf32>
        %c1073741824_i32_96 = arith.constant 1073741824 : i32
        %225 = vector.broadcast %c1073741824_i32_96 : i32 to vector<8x128xi32>
        %226 = arith.select %224, %29, %225 : vector<8x128xi1>, vector<8x128xi32>
        %cst_97 = arith.constant dense<2147483647> : vector<8xi32>
        %227 = vector.multi_reduction <minsi>, %226, %cst_97 [1] : vector<8x128xi32> to vector<8xi32>
        %228 = vector.shape_cast %227 : vector<8xi32> to vector<8x1xi32>
        %229 = vector.broadcast %228 : vector<8x1xi32> to vector<8x128xi32>
        %230 = arith.cmpi eq, %29, %229 : vector<8x128xi32>
        %cst_98 = arith.constant 0.000000e+00 : f32
        %231 = vector.broadcast %cst_98 : f32 to vector<8x128xf32>
        %232 = arith.select %230, %25, %231 : vector<8x128xi1>, vector<8x128xf32>
        %cst_99 = arith.constant dense<0.000000e+00> : vector<8xf32>
        %233 = vector.multi_reduction <add>, %232, %cst_99 [1] : vector<8x128xf32> to vector<8xf32>
        %234 = vector.shape_cast %233 : vector<8xf32> to vector<8x1xf32>
        %c0_100 = arith.constant 0 : index
        %c0_101 = arith.constant 0 : index
        %235 = vector.load %arg12[%c0_100, %c0_101] : memref<8x1xf32, #tpu.memory_space<vmem>>, vector<8x1xf32>
        %236 = arith.cmpf ogt, %222, %235 : vector<8x1xf32>
        %c0_102 = arith.constant 0 : index
        %c0_103 = arith.constant 0 : index
        %237 = vector.load %arg14[%c0_102, %c0_103] : memref<8x1xi32, #tpu.memory_space<vmem>>, vector<8x1xi32>
        %238 = arith.select %236, %228, %237 : vector<8x1xi1>, vector<8x1xi32>
        %c0_104 = arith.constant 0 : index
        %c0_105 = arith.constant 0 : index
        %239 = vector.load %arg14[%c0_104, %c0_105] : memref<8x1xi32, #tpu.memory_space<vmem>>, vector<8x1xi32>
        tpu.vector_store %arg14[%c0_104, %c0_105], %238 {strides = array<i32>} : memref<8x1xi32, #tpu.memory_space<vmem>>, vector<8x1xi32>,
        %c0_106 = arith.constant 0 : index
        %c0_107 = arith.constant 0 : index
        %240 = vector.load %arg13[%c0_106, %c0_107] : memref<8x1xf32, #tpu.memory_space<vmem>>, vector<8x1xf32>
        %241 = arith.select %236, %234, %240 : vector<8x1xi1>, vector<8x1xf32>
        %c0_108 = arith.constant 0 : index
        %c0_109 = arith.constant 0 : index
        %242 = vector.load %arg13[%c0_108, %c0_109] : memref<8x1xf32, #tpu.memory_space<vmem>>, vector<8x1xf32>
        tpu.vector_store %arg13[%c0_108, %c0_109], %241 {strides = array<i32>} : memref<8x1xf32, #tpu.memory_space<vmem>>, vector<8x1xf32>,
        %c0_110 = arith.constant 0 : index
        %c0_111 = arith.constant 0 : index
        %243 = vector.load %arg12[%c0_110, %c0_111] : memref<8x1xf32, #tpu.memory_space<vmem>>, vector<8x1xf32>
        %244 = arith.maximumf %243, %222 : vector<8x1xf32>
        %c0_112 = arith.constant 0 : index
        %c0_113 = arith.constant 0 : index
        %245 = vector.load %arg12[%c0_112, %c0_113] : memref<8x1xf32, #tpu.memory_space<vmem>>, vector<8x1xf32>
        tpu.vector_store %arg12[%c0_112, %c0_113], %244 {strides = array<i32>} : memref<8x1xf32, #tpu.memory_space<vmem>>, vector<8x1xf32>,
      } else {
      }
    } else {
    }
    %c1_i32_7 = arith.constant 1 : i32
    %18 = arith.cmpi eq, %arg1, %c1_i32_7 : i32
    %19 = arith.andi %18, %9 : i1
    %20 = arith.extui %19 : i1 to i32
    %c0_i32_8 = arith.constant 0 : i32
    %21 = arith.cmpi ne, %20, %c0_i32_8 : i32
    scf.if %21 {
      %c0 = arith.constant 0 : index
      %c0_11 = arith.constant 0 : index
      %25 = vector.load %arg4[%c0, %c0_11] : memref<8x128xf32, #tpu.memory_space<vmem>>, vector<8x128xf32>
      %26 = tpu.iota {dimensions = array<i32: 1>} : vector<8x128xi32>
      %c128_i32 = arith.constant 128 : i32
      %27 = arith.muli %arg2, %c128_i32 : i32
      %28 = vector.broadcast %27 : i32 to vector<8x128xi32>
      %29 = arith.addi %26, %28 : vector<8x128xi32>
      %c0_12 = arith.constant 0 : index
      %c0_13 = arith.constant 0 : index
      %30 = vector.load %arg5[%c0_12, %c0_13] : memref<8x1xf32, #tpu.memory_space<vmem>>, vector<8x1xf32>
      %cst = arith.constant 9.99999974E-6 : f32
      %31 = vector.broadcast %cst : f32 to vector<8x1xf32>
      %32 = arith.cmpf olt, %30, %31 : vector<8x1xf32>
      %cst_14 = arith.constant 1.000000e+00 : f32
      %33 = vector.broadcast %cst_14 : f32 to vector<8x1xf32>
      %34 = arith.select %32, %33, %30 : vector<8x1xi1>, vector<8x1xf32>
      %c0_15 = arith.constant 0 : index
      %c0_16 = arith.constant 0 : index
      %35 = vector.load %arg9[%c0_15, %c0_16] : memref<8x8xf32, #tpu.memory_space<vmem>>, vector<8x1xf32>
      %c0_17 = arith.constant 0 : index
      %c0_18 = arith.constant 0 : index
      %36 = vector.load %arg6[%c0_17, %c0_18] : memref<8x1xf32, #tpu.memory_space<vmem>>, vector<8x1xf32>
      %37 = math.log %36 : vector<8x1xf32>
      %38 = arith.mulf %34, %37 : vector<8x1xf32>
      %39 = arith.addf %35, %38 : vector<8x1xf32>
      %40 = vector.broadcast %39 : vector<8x1xf32> to vector<8x128xf32>
      %41 = arith.cmpf oge, %25, %40 : vector<8x128xf32>
      %cst_19 = arith.constant 1.000000e+00 : f32
      %42 = vector.broadcast %cst_19 : f32 to vector<8x1xf32>
      %43 = arith.divf %42, %34 : vector<8x1xf32>
      %44 = vector.broadcast %43 : vector<8x1xf32> to vector<8x128xf32>
      %45 = arith.mulf %25, %44 : vector<8x128xf32>
      %cst_20 = arith.constant 0xFF800000 : f32
      %46 = vector.broadcast %cst_20 : f32 to vector<8x128xf32>
      %47 = arith.select %41, %45, %46 : vector<8x128xi1>, vector<8x128xf32>
      %c0_21 = arith.constant 0 : index
      %48 = memref.load %arg3[%c0_21] : memref<2xi32, #tpu.memory_space<smem>>
      %c8_i32 = arith.constant 8 : i32
      %49 = arith.muli %arg0, %c8_i32 : i32
      %50 = tpu.iota {dimensions = array<i32: 0>} : vector<8x128xi32>
      %51 = vector.broadcast %49 : i32 to vector<8x128xi32>
      %52 = arith.addi %50, %51 : vector<8x128xi32>
      %c-1640531535_i32 = arith.constant -1640531535 : i32
      %53 = vector.broadcast %c-1640531535_i32 : i32 to vector<8x128xi32>
      %54 = arith.muli %52, %53 : vector<8x128xi32>
      %c-2048144789_i32 = arith.constant -2048144789 : i32
      %55 = vector.broadcast %c-2048144789_i32 : i32 to vector<8x128xi32>
      %56 = arith.muli %29, %55 : vector<8x128xi32>
      %57 = arith.addi %54, %56 : vector<8x128xi32>
      %58 = vector.broadcast %48 : i32 to vector<8x128xi32>
      %59 = arith.xori %57, %58 : vector<8x128xi32>
      %c15_i32 = arith.constant 15 : i32
      %60 = vector.broadcast %c15_i32 : i32 to vector<8x128xi32>
      %61 = arith.shrui %59, %60 : vector<8x128xi32>
      %62 = arith.xori %59, %61 : vector<8x128xi32>
      %c-1028477387_i32 = arith.constant -1028477387 : i32
      %63 = vector.broadcast %c-1028477387_i32 : i32 to vector<8x128xi32>
      %64 = arith.muli %62, %63 : vector<8x128xi32>
      %c13_i32 = arith.constant 13 : i32
      %65 = vector.broadcast %c13_i32 : i32 to vector<8x128xi32>
      %66 = arith.shrui %64, %65 : vector<8x128xi32>
      %67 = arith.xori %64, %66 : vector<8x128xi32>
      %c9_i32 = arith.constant 9 : i32
      %68 = vector.broadcast %c9_i32 : i32 to vector<8x128xi32>
      %69 = arith.shrui %67, %68 : vector<8x128xi32>
      %c1065353216_i32 = arith.constant 1065353216 : i32
      %70 = vector.broadcast %c1065353216_i32 : i32 to vector<8x128xi32>
      %71 = arith.ori %69, %70 : vector<8x128xi32>
      %72 = tpu.bitcast %71 : vector<8x128xi32> -> vector<8x128xf32>
      %cst_22 = arith.constant 1.000000e+00 : f32
      %73 = vector.broadcast %cst_22 : f32 to vector<8x128xf32>
      %74 = arith.subf %72, %73 : vector<8x128xf32>
      %cst_23 = arith.constant 2.98023224E-8 : f32
      %75 = vector.broadcast %cst_23 : f32 to vector<8x128xf32>
      %76 = arith.addf %74, %75 : vector<8x128xf32>
      %77 = math.log %76 : vector<8x128xf32>
      %cst_24 = arith.constant 0.000000e+00 : f32
      %78 = vector.broadcast %cst_24 : f32 to vector<8x128xf32>
      %79 = arith.subf %78, %77 : vector<8x128xf32>
      %80 = math.log %79 : vector<8x128xf32>
      %cst_25 = arith.constant 0.000000e+00 : f32
      %81 = vector.broadcast %cst_25 : f32 to vector<8x128xf32>
      %82 = arith.subf %81, %80 : vector<8x128xf32>
      %83 = arith.addf %47, %82 : vector<8x128xf32>
      %cst_26 = arith.constant dense<0xFF800000> : vector<8xf32>
      %84 = vector.multi_reduction <maximumf>, %83, %cst_26 [1] : vector<8x128xf32> to vector<8xf32>
      %85 = vector.shape_cast %84 : vector<8xf32> to vector<8x1xf32>
      %86 = vector.broadcast %85 : vector<8x1xf32> to vector<8x128xf32>
      %87 = arith.cmpf oeq, %83, %86 : vector<8x128xf32>
      %c1073741824_i32 = arith.constant 1073741824 : i32
      %88 = vector.broadcast %c1073741824_i32 : i32 to vector<8x128xi32>
      %89 = arith.select %87, %29, %88 : vector<8x128xi1>, vector<8x128xi32>
      %cst_27 = arith.constant dense<2147483647> : vector<8xi32>
      %90 = vector.multi_reduction <minsi>, %89, %cst_27 [1] : vector<8x128xi32> to vector<8xi32>
      %91 = vector.shape_cast %90 : vector<8xi32> to vector<8x1xi32>
      %92 = vector.broadcast %91 : vector<8x1xi32> to vector<8x128xi32>
      %93 = arith.cmpi eq, %29, %92 : vector<8x128xi32>
      %cst_28 = arith.constant 0.000000e+00 : f32
      %94 = vector.broadcast %cst_28 : f32 to vector<8x128xf32>
      %95 = arith.select %93, %25, %94 : vector<8x128xi1>, vector<8x128xf32>
      %cst_29 = arith.constant dense<0.000000e+00> : vector<8xf32>
      %96 = vector.multi_reduction <add>, %95, %cst_29 [1] : vector<8x128xf32> to vector<8xf32>
      %97 = vector.shape_cast %96 : vector<8xf32> to vector<8x1xf32>
      %c0_30 = arith.constant 0 : index
      %c0_31 = arith.constant 0 : index
      %98 = vector.load %arg12[%c0_30, %c0_31] : memref<8x1xf32, #tpu.memory_space<vmem>>, vector<8x1xf32>
      %99 = arith.cmpf ogt, %85, %98 : vector<8x1xf32>
      %c0_32 = arith.constant 0 : index
      %c0_33 = arith.constant 0 : index
      %100 = vector.load %arg14[%c0_32, %c0_33] : memref<8x1xi32, #tpu.memory_space<vmem>>, vector<8x1xi32>
      %101 = arith.select %99, %91, %100 : vector<8x1xi1>, vector<8x1xi32>
      %c0_34 = arith.constant 0 : index
      %c0_35 = arith.constant 0 : index
      %102 = vector.load %arg14[%c0_34, %c0_35] : memref<8x1xi32, #tpu.memory_space<vmem>>, vector<8x1xi32>
      tpu.vector_store %arg14[%c0_34, %c0_35], %101 {strides = array<i32>} : memref<8x1xi32, #tpu.memory_space<vmem>>, vector<8x1xi32>,
      %c0_36 = arith.constant 0 : index
      %c0_37 = arith.constant 0 : index
      %103 = vector.load %arg13[%c0_36, %c0_37] : memref<8x1xf32, #tpu.memory_space<vmem>>, vector<8x1xf32>
      %104 = arith.select %99, %97, %103 : vector<8x1xi1>, vector<8x1xf32>
      %c0_38 = arith.constant 0 : index
      %c0_39 = arith.constant 0 : index
      %105 = vector.load %arg13[%c0_38, %c0_39] : memref<8x1xf32, #tpu.memory_space<vmem>>, vector<8x1xf32>
      tpu.vector_store %arg13[%c0_38, %c0_39], %104 {strides = array<i32>} : memref<8x1xf32, #tpu.memory_space<vmem>>, vector<8x1xf32>,
      %c0_40 = arith.constant 0 : index
      %c0_41 = arith.constant 0 : index
      %106 = vector.load %arg12[%c0_40, %c0_41] : memref<8x1xf32, #tpu.memory_space<vmem>>, vector<8x1xf32>
      %107 = arith.maximumf %106, %85 : vector<8x1xf32>
      %c0_42 = arith.constant 0 : index
      %c0_43 = arith.constant 0 : index
      %108 = vector.load %arg12[%c0_42, %c0_43] : memref<8x1xf32, #tpu.memory_space<vmem>>, vector<8x1xf32>
      tpu.vector_store %arg12[%c0_42, %c0_43], %107 {strides = array<i32>} : memref<8x1xf32, #tpu.memory_space<vmem>>, vector<8x1xf32>,
    } else {
    }
    %c2_i32_9 = arith.constant 2 : i32
    %22 = arith.cmpi eq, %arg1, %c2_i32_9 : i32
    %23 = arith.extui %22 : i1 to i32
    %c0_i32_10 = arith.constant 0 : i32
    %24 = arith.cmpi ne, %23, %c0_i32_10 : i32
    scf.if %24 {
      %c0 = arith.constant 0 : index
      %c0_11 = arith.constant 0 : index
      %25 = vector.load %arg4[%c0, %c0_11] : memref<8x128xf32, #tpu.memory_space<vmem>>, vector<8x128xf32>
      %c0_12 = arith.constant 0 : index
      %c0_13 = arith.constant 0 : index
      %26 = vector.load %arg5[%c0_12, %c0_13] : memref<8x1xf32, #tpu.memory_space<vmem>>, vector<8x1xf32>
      %cst = arith.constant 9.99999974E-6 : f32
      %27 = vector.broadcast %cst : f32 to vector<8x1xf32>
      %28 = arith.cmpf olt, %26, %27 : vector<8x1xf32>
      %c0_14 = arith.constant 0 : index
      %c0_15 = arith.constant 0 : index
      %29 = vector.load %arg9[%c0_14, %c0_15] : memref<8x8xf32, #tpu.memory_space<vmem>>, vector<8x1xf32>
      %c0_16 = arith.constant 0 : index
      %c0_17 = arith.constant 0 : index
      %30 = vector.load %arg13[%c0_16, %c0_17] : memref<8x1xf32, #tpu.memory_space<vmem>>, vector<8x1xf32>
      %31 = arith.select %28, %29, %30 : vector<8x1xi1>, vector<8x1xf32>
      %c0_18 = arith.constant 0 : index
      %c0_19 = arith.constant 0 : index
      %32 = vector.load %arg15[%c0_18, %c0_19] : memref<8x1xi32, #tpu.memory_space<vmem>>, vector<8x1xi32>
      %33 = vector.broadcast %31 : vector<8x1xf32> to vector<8x128xf32>
      %34 = arith.cmpf oge, %25, %33 : vector<8x128xf32>
      %35 = arith.extui %34 : vector<8x128xi1> to vector<8x128xi32>
      %cst_20 = arith.constant dense<0> : vector<8xi32>
      %36 = vector.multi_reduction <add>, %35, %cst_20 [1] : vector<8x128xi32> to vector<8xi32>
      %37 = vector.shape_cast %36 : vector<8xi32> to vector<8x1xi32>
      %38 = arith.addi %32, %37 : vector<8x1xi32>
      %c0_21 = arith.constant 0 : index
      %c0_22 = arith.constant 0 : index
      %39 = vector.load %arg15[%c0_21, %c0_22] : memref<8x1xi32, #tpu.memory_space<vmem>>, vector<8x1xi32>
      tpu.vector_store %arg15[%c0_21, %c0_22], %38 {strides = array<i32>} : memref<8x1xi32, #tpu.memory_space<vmem>>, vector<8x1xi32>,
      %c1_i32_23 = arith.constant 1 : i32
      %40 = arith.cmpi eq, %arg2, %c1_i32_23 : i32
      %41 = arith.extui %40 : i1 to i32
      %c0_i32_24 = arith.constant 0 : i32
      %42 = arith.cmpi ne, %41, %c0_i32_24 : i32
      scf.if %42 {
        %c0_25 = arith.constant 0 : index
        %c0_26 = arith.constant 0 : index
        %43 = vector.load %arg10[%c0_25, %c0_26] : memref<8x8xi32, #tpu.memory_space<vmem>>, vector<8x1xi32>
        %c0_27 = arith.constant 0 : index
        %c0_28 = arith.constant 0 : index
        %44 = vector.load %arg14[%c0_27, %c0_28] : memref<8x1xi32, #tpu.memory_space<vmem>>, vector<8x1xi32>
        %45 = arith.select %28, %43, %44 : vector<8x1xi1>, vector<8x1xi32>
        %c0_29 = arith.constant 0 : index
        %c0_30 = arith.constant 0 : index
        %46 = vector.load %arg11[%c0_29, %c0_30] : memref<8x1xf32, #tpu.memory_space<vmem>>, vector<8x1xf32>
        %47 = math.log %46 : vector<8x1xf32>
        %48 = arith.addf %29, %47 : vector<8x1xf32>
        %c0_31 = arith.constant 0 : index
        %c0_32 = arith.constant 0 : index
        %49 = vector.load %arg7[%c0_31, %c0_32] : memref<8x8xi32, #tpu.memory_space<vmem>>, vector<8x1xi32>
        tpu.vector_store %arg7[%c0_31, %c0_32], %45 {strides = array<i32>} : memref<8x8xi32, #tpu.memory_space<vmem>>, vector<8x1xi32>,
        %c0_33 = arith.constant 0 : index
        %c0_34 = arith.constant 0 : index
        %50 = vector.load %arg10[%c0_33, %c0_34] : memref<8x8xi32, #tpu.memory_space<vmem>>, vector<8x4xi32>
        %c0_35 = arith.constant 0 : index
        %c1 = arith.constant 1 : index
        %51 = vector.load %arg7[%c0_35, %c1] : memref<8x8xi32, #tpu.memory_space<vmem>>, vector<8x4xi32>
        tpu.vector_store %arg7[%c0_35, %c1], %50 {strides = array<i32>} : memref<8x8xi32, #tpu.memory_space<vmem>>, vector<8x4xi32>,
        %c0_36 = arith.constant 0 : index
        %c0_37 = arith.constant 0 : index
        %52 = vector.load %arg15[%c0_36, %c0_37] : memref<8x1xi32, #tpu.memory_space<vmem>>, vector<8x1xi32>
        %c0_38 = arith.constant 0 : index
        %c5 = arith.constant 5 : index
        %53 = vector.load %arg7[%c0_38, %c5] : memref<8x8xi32, #tpu.memory_space<vmem>>, vector<8x1xi32>
        tpu.vector_store %arg7[%c0_38, %c5], %52 {strides = array<i32>} : memref<8x8xi32, #tpu.memory_space<vmem>>, vector<8x1xi32>,
        %54 = arith.subf %31, %48 : vector<8x1xf32>
        %c0_39 = arith.constant 0 : index
        %c0_40 = arith.constant 0 : index
        %55 = vector.load %arg8[%c0_39, %c0_40] : memref<8x8xf32, #tpu.memory_space<vmem>>, vector<8x1xf32>
        tpu.vector_store %arg8[%c0_39, %c0_40], %54 {strides = array<i32>} : memref<8x8xf32, #tpu.memory_space<vmem>>, vector<8x1xf32>,
        %c0_41 = arith.constant 0 : index
        %c0_42 = arith.constant 0 : index
        %56 = vector.load %arg9[%c0_41, %c0_42] : memref<8x8xf32, #tpu.memory_space<vmem>>, vector<8x4xf32>
        %57 = vector.broadcast %48 : vector<8x1xf32> to vector<8x4xf32>
        %58 = arith.subf %56, %57 : vector<8x4xf32>
        %c0_43 = arith.constant 0 : index
        %c1_44 = arith.constant 1 : index
        %59 = vector.load %arg8[%c0_43, %c1_44] : memref<8x8xf32, #tpu.memory_space<vmem>>, vector<8x4xf32>
        tpu.vector_store %arg8[%c0_43, %c1_44], %58 {strides = array<i32>} : memref<8x8xf32, #tpu.memory_space<vmem>>, vector<8x4xf32>,
        %c0_i32_45 = arith.constant 0 : i32
        %60 = vector.broadcast %c0_i32_45 : i32 to vector<8x2xi32>
        %c0_46 = arith.constant 0 : index
        %c6 = arith.constant 6 : index
        %61 = vector.load %arg7[%c0_46, %c6] : memref<8x8xi32, #tpu.memory_space<vmem>>, vector<8x2xi32>
        tpu.vector_store %arg7[%c0_46, %c6], %60 {strides = array<i32>} : memref<8x8xi32, #tpu.memory_space<vmem>>, vector<8x2xi32>,
        %cst_47 = arith.constant 0.000000e+00 : f32
        %62 = vector.broadcast %cst_47 : f32 to vector<8x3xf32>
        %c0_48 = arith.constant 0 : index
        %c5_49 = arith.constant 5 : index
        %63 = vector.load %arg8[%c0_48, %c5_49] : memref<8x8xf32, #tpu.memory_space<vmem>>, vector<8x3xf32>
        tpu.vector_store %arg8[%c0_48, %c5_49], %62 {strides = array<i32>} : memref<8x8xf32, #tpu.memory_space<vmem>>, vector<8x3xf32>,
      } else {
      }
    } else {
    }
    return
  }
  func.func @transform_0(%arg0: i32, %arg1: i32, %arg2: i32, %arg3: memref<2xi32, #tpu.memory_space<smem>>) -> (i32, i32) {
    %c1_i32 = arith.constant 1 : i32
    %0 = arith.addi %c1_i32, %arg0 : i32
    %1 = arith.index_cast %0 : i32 to index
    %2 = memref.load %arg3[%1] : memref<2xi32, #tpu.memory_space<smem>>
    %c3_i32 = arith.constant 3 : i32
    %3 = arith.andi %2, %c3_i32 : i32
    %c3_i32_0 = arith.constant 3 : i32
    %4 = arith.cmpi ne, %3, %c3_i32_0 : i32
    %c1_i32_1 = arith.constant 1 : i32
    %5 = arith.cmpi eq, %arg1, %c1_i32_1 : i32
    %6 = arith.andi %5, %4 : i1
    %c1_i32_2 = arith.constant 1 : i32
    %7 = arith.select %6, %c1_i32_2, %arg2 : i32
    %c0_i32 = arith.constant 0 : i32
    return %arg0, %7 : i32, i32
  }
  func.func @transform_1(%arg0: i32, %arg1: i32, %arg2: i32, %arg3: memref<2xi32, #tpu.memory_space<smem>>) -> (i32, i32) {
    %c0_i32 = arith.constant 0 : i32
    %c0_i32_0 = arith.constant 0 : i32
    return %arg0, %c0_i32 : i32, i32
  }
  func.func @transform_2(%arg0: i32, %arg1: i32, %arg2: i32, %arg3: memref<2xi32, #tpu.memory_space<smem>>) -> (i32, i32) {
    %c0_i32 = arith.constant 0 : i32
    %c0_i32_0 = arith.constant 0 : i32
    return %arg0, %c0_i32 : i32, i32
  }
  func.func @transform_3(%arg0: i32, %arg1: i32, %arg2: i32, %arg3: memref<2xi32, #tpu.memory_space<smem>>) -> (i32, i32) {
    %c0_i32 = arith.constant 0 : i32
    %c0_i32_0 = arith.constant 0 : i32
    return %arg0, %c0_i32 : i32, i32
  }
  func.func @transform_4(%arg0: i32, %arg1: i32, %arg2: i32, %arg3: memref<2xi32, #tpu.memory_space<smem>>) -> (i32, i32) {
    %c0_i32 = arith.constant 0 : i32
    %c0_i32_0 = arith.constant 0 : i32
    return %arg0, %c0_i32 : i32, i32
  }
}

</mosaic_0001>

<bundles_post_ra>
// kernel: tpu_custom_call.1
= control target key start
LH: loop header
LB: loop body
LE: loop exit
PB: predicated region body
PF: predicated region fallthrough
CT: control target
= control target key end

     0   :  { %s1262_s21 = smov [#allocation10]   ;;  %s1562_s0 = inlined_call_operand.vmem [shape: s32[2], index: 0, kind: input, shape index: {}]   ;;  %s1563_s1 = inlined_call_operand.vmem [shape: f32[8,256], index: 1, kind: input, shape index: {}]   ;;  %s1564_s2 = inlined_call_operand.vmem [shape: f32[8,1], index: 2, kind: input, shape index: {}]   ;;  %s1565_s3 = inlined_call_operand.vmem [shape: f32[8,1], index: 3, kind: input, shape index: {}]   ;;  %s1566_s4 = inlined_call_operand.hbm [shape: s32[8,8], index: 4, kind: output, shape index: {0}]   ;;  %s1567_s5 = inlined_call_operand.hbm [shape: f32[8,8], index: 5, kind: output, shape index: {1}]  }
   0x1   :  { %s12_s20 = sshll.u32 %s1562_s0, 4  ;;  %s13_s20 = int_to_ptr.vmem [resolvable:$true] %s12_s20 }
   0x2   :  { %15 = dma.vmem_to_smem %s13_s20, 16, %s1262_s21, [#allocation9] }
   0x3   :  { %1232 = dma.done.wait [#allocation9], 16 }
   0x4   :  { %1233 = vsyncadd [#allocation9], 4294967280 }
   0x5   :  { %18 = sfence }
   0x6   :  { %19 = vsyncpa [#allocation12], 0 }
   0x7   :  { %20 = vsyncpa [#allocation14], 0  ;;  %s1310_s22 = smov 0   ;;  %s1312_s23 = smov 0  }
   0x8   :  { %s1314_s24 = smov 0   ;;  %s1316_s25 = smov 0  }
   0x9   :  { %s1318_s26 = smov 0  }
   0xa LB: > { %s1025_s0 = sadd.s32 4294967295, %s1260_s26   ;;  %s38_s27 = sadd.s32 1, %s1252_s24  ;;  %s1260_s26 = sphi %s1318_s26, %s26_s26   ;;  %s1256_s25 = sphi %s1316_s25, %s1576_s25   ;;  %s1252_s24 = sphi %s1314_s24, %s1575_s24   ;;  %s1248_s23 = sphi %s1312_s23, %s1574_s23   ;;  %s1244_s22 = sphi %s1310_s22, %s1573_s22  }
   0xb   : > { %p39_p0 = scmp.ge.s32.totalorder %s38_s27, 2  ;;  %s41_s28 = sadd.s32 1, %s1256_s25 }
   0xc   : > { %p1034_p1 = scmp.ge.s32.totalorder %s1260_s26, 1  ;;  %p250_p2 = scmp.lt.s32.totalorder %s1260_s26, 7 }
   0xd   : > { %s1578_s27 = smov (%p39_p0, %s38_s27), 0  ;;  %s1580_s28 = smov (!%p39_p0, %s41_s28), %s1256_s25 }
   0xe   : > { %p251_p3 = pnand %p1034_p1, %p250_p2  ;;  %p43_p4 = scmp.ge.s32.totalorder %s1580_s28, 3 }
   0xf   : > { %s1035_s29 = sld [smem:[#allocation10 + $0x1]] (!%p251_p3)  ;;  %p333_p5 = scmp.eq.s32.totalorder (!%p251_p3), %s1248_s23, 0 }
  0x10   : > { %s1582_s28 = smov (%p43_p4, %s1580_s28), 0  ;;  %254 = sbr.rel (%p251_p3) target bundleno = 4615 (0x1207), region = 32 }
  0x11   : > { %p334_p6 = scmp.eq.s32.totalorder (!%p251_p3), %s1244_s22, 0  ;;  %p294_p8 = scmp.eq.s32.totalorder (!%p251_p3), %s1248_s23, 1 }
  0x13   : > { %p1347_p7 = pnand (!%p251_p3), %p334_p6, %p333_p5 }
  0x15   : > { %s292_s6 = sand.u32 3, %s1035_s29  ;;  %s324_s7 = sand.u32 1, %s1035_s29 }
  0x16   : > { %p293_p9 = scmp.ne.s32.totalorder %s292_s6, 3  ;;  %p1352_p10 = scmp.ne.s32.totalorder %s324_s7, 0 }
  0x17   : > { %s326_s9 = sand.u32 2, %s1035_s29 }
  0x18   : > { %p295_p11 = pnand %p294_p8, %p293_p9  ;;  %p327_p12 = scmp.ne.s32.totalorder %s326_s9, 0 }
  0x19   : > { %p1358_p13 = scmp.eq.s32.totalorder %s326_s9, 0 }
  0x1a   : > { %s1036_s11 = scalar_select %p295_p11, %s1244_s22, 1 }
  0x1b   : > { %p329_p0 = pnand %p1358_p13, %p1352_p10  ;;  %p331_p1 = pnand %p327_p12, %p1352_p10 }
  0x1c   : > { %p300_p2 = scmp.lt.s32.totalorder %s1036_s11, 1  ;;  %338 = sbr.rel (%p1347_p7) target bundleno = 41 (0x29), region = 36 }
  0x1d   : > { %p1369_p3 = pneg %p331_p1 }
  0x1e   : > { %s1584_s11 = smov (!%p300_p2, %s1036_s11), 1 }
  0x1f   : > { %s1037_s13 = sshll.u32 %s1584_s11, 3 }
  0x20   : > { %s1376_s16 = scalar_lea.vmem %s1563_s1, %s1037_s13 }
  0x21   : > { %vm339_vm0 = vcmask 64512   ;;  %vm342_vm1 = vcmask 7168   ;;  %v1263_v0 = vmov -inf   ;;  %v1264_v1 = vmov 0  }
  0x22   : > { %340 = vst.msk [vmem:[#allocation2] sm:$0xff] %vm339_vm0, %v1263_v0  ;;  %v1265_v2 = vmov 0.0   ;;  %v1266_v3 = vmov -1e+30  }
  0x23   : > { %341 = vst.msk [vmem:[#allocation3] sm:$0xff] %vm339_vm0, %v1264_v1 }
  0x24   : > { %343 = vst.msk [vmem:[#allocation4] sm:$0xff] %vm342_vm1, %v1265_v2 }
  0x25   : > { %344 = vst.msk [vmem:[#allocation5] sm:$0xff] %vm342_vm1, %v1263_v0 }
  0x26   : > { %346 = vst.msk [vmem:[#allocation7] sm:$0xff] %vm342_vm1, %v1264_v1 }
  0x27   : > { %347 = vst.msk [vmem:[#allocation8] sm:$0xff] %vm342_vm1, %v1264_v1 }
  0x28   : > { %345 = vst.msk [vmem:[#allocation6] sm:$0xff] %vm342_vm1, %v1266_v3 }
  0x29 PF: > { %p1039_p4 = scmp.ne.s32.totalorder %s1248_s23, 0 }
  0x2a   : > { %s1040_s17 = sshll.u32 (!%p1039_p4), %s1244_s22, 7 }
  0x2b   : > { %350 = sbr.rel (%p1039_p4) target bundleno = 3468 (0xd8c), region = 40 }
  0x30   : > { %v1382_v4 = vld [vmem:[%s1376_s16] sm:$0xff]  ;;  %v352_v5 = vlaneseq  ;;  %v355_v7 = vstv %s1040_s17  ;;  %vm376_vm2 = vcmask 39968   ;;  %vm399_vm6 = vcmask 48168   ;;  %s650_s20 = sld [smem:[#allocation10]] (!%p329_p0) }
  0x31   : > { %358 = vmax.xlane.f32.xlu0 %v1382_v4  ;;  %v1389_v8 = vld [vmem:[#allocation2] sm:$0xff]  ;;  %vm422_vm10 = vcmask 56368   ;;  %vm445_vm14 = vcmask 64568   ;;  %vm450_vm15 = vcmask 64512   ;;  %vm486_vm0 = vcmask 7168  }
  0x32   : > { %v1387_v6 = vand.u32 127, %v352_v5 }
  0x34   : > { %v1392_v9 = vadd.s32 %v355_v7, %v1387_v6 }
  0xa4   : > { %v1394_v10 = vpop.xlane.xlu0 %358 }
  0xa5   : > { %vm360_vm3 = vcmp.eq.f32.partialorder %v1382_v4, %v1394_v10  ;;  %377 = vst.msk [vmem:[#allocation2] sm:$0xff] %vm376_vm2, %v1394_v10 }
  0xa6   : > { %v361_v11 = vsel %vm360_vm3, %v1392_v9, 1073741824 }
  0xa7   : > { %v363_v12 = vshra.s32 %v361_v11, 16  ;;  %v362_v14 = vand.u32 65535, %v361_v11 }
  0xa9   : > { %v365_v13 = vcvt.s32.f32 %v363_v12  ;;  %v364_v16 = vcvt.s32.f32 %v362_v14 }
  0xab   : > { %366 = vmin.xlane.f32.xlu0 %v365_v13 }
 0x11e   : > { %v367_v15 = vpop.xlane.xlu0 %366 }
 0x11f   : > { %vm368_vm4 = vcmp.eq.f32.partialorder %v365_v13, %v367_v15  ;;  %v373_v18 = vcvt.f32.s32 %v367_v15 }
 0x120   : > { %v369_v17 = vsel %vm368_vm4, %v364_v16, inf  ;;  %vm525_vm4 = vcmask 15368  }
 0x121   : > { %370 = vmin.xlane.f32.xlu1 %v369_v17  ;;  %v374_v20 = vshll.u32 %v373_v18, 16 }
 0x194   : > { %v371_v19 = vpop.xlane.xlu1 %370 }
 0x195   : > { %v372_v21 = vcvt.f32.s32 %v371_v19 }
 0x197   : > { %v375_v22 = vadd.s32 %v374_v20, %v372_v21 }
 0x199   : > { %378 = vst.msk [vmem:[#allocation3] sm:$0xff] %vm376_vm2, %v375_v22  ;;  %vm379_vm5 = vcmp.eq.s32.totalorder %v1392_v9, %v375_v22 }
 0x19a   : > { %v380_v23 = vsel %vm379_vm5, -inf, %v1382_v4 }
 0x19b   : > { %381 = vmax.xlane.f32.xlu1 %v380_v23 }
 0x20e   : > { %v382_v24 = vpop.xlane.xlu1 %381 }
 0x20f   : > { %vm383_vm7 = vcmp.eq.f32.partialorder %v380_v23, %v382_v24  ;;  %400 = vst.msk [vmem:[#allocation2] sm:$0xff] %vm399_vm6, %v382_v24 }
 0x210   : > { %v384_v25 = vsel %vm383_vm7, %v1392_v9, 1073741824 }
 0x211   : > { %v386_v26 = vshra.s32 %v384_v25, 16  ;;  %v385_v28 = vand.u32 65535, %v384_v25 }
 0x213   : > { %v388_v27 = vcvt.s32.f32 %v386_v26  ;;  %v387_v30 = vcvt.s32.f32 %v385_v28 }
 0x215   : > { %389 = vmin.xlane.f32.xlu2 %v388_v27 }
 0x288   : > { %v390_v29 = vpop.xlane.xlu2 %389 }
 0x289   : > { %vm391_vm8 = vcmp.eq.f32.partialorder %v388_v27, %v390_v29  ;;  %v396_v32 = vcvt.f32.s32 %v390_v29 }
 0x28a   : > { %v392_v31 = vsel %vm391_vm8, %v387_v30, inf  ;;  %vm564_vm8 = vcmask 23568  }
 0x28b   : > { %393 = vmin.xlane.f32.xlu2 %v392_v31  ;;  %v397_v34 = vshll.u32 %v396_v32, 16 }
 0x2fe   : > { %v394_v33 = vpop.xlane.xlu2 %393 }
 0x2ff   : > { %v395_v35 = vcvt.f32.s32 %v394_v33 }
 0x301   : > { %v398_v36 = vadd.s32 %v397_v34, %v395_v35 }
 0x303   : > { %401 = vst.msk [vmem:[#allocation3] sm:$0xff] %vm399_vm6, %v398_v36  ;;  %vm402_vm9 = vcmp.eq.s32.totalorder %v1392_v9, %v398_v36 }
 0x304   : > { %v403_v37 = vsel %vm402_vm9, -inf, %v380_v23 }
 0x305   : > { %404 = vmax.xlane.f32.xlu0 %v403_v37 }
 0x378   : > { %v405_v38 = vpop.xlane.xlu0 %404 }
 0x379   : > { %vm406_vm11 = vcmp.eq.f32.partialorder %v403_v37, %v405_v38  ;;  %423 = vst.msk [vmem:[#allocation2] sm:$0xff] %vm422_vm10, %v405_v38 }
 0x37a   : > { %v407_v39 = vsel %vm406_vm11, %v1392_v9, 1073741824 }
 0x37b   : > { %v409_v40 = vshra.s32 %v407_v39, 16  ;;  %v408_v42 = vand.u32 65535, %v407_v39 }
 0x37d   : > { %v411_v41 = vcvt.s32.f32 %v409_v40  ;;  %v410_v44 = vcvt.s32.f32 %v408_v42 }
 0x37f   : > { %412 = vmin.xlane.f32.xlu1 %v411_v41 }
 0x3f2   : > { %v413_v43 = vpop.xlane.xlu1 %412 }
 0x3f3   : > { %vm414_vm12 = vcmp.eq.f32.partialorder %v411_v41, %v413_v43  ;;  %v419_v46 = vcvt.f32.s32 %v413_v43 }
 0x3f4   : > { %v415_v45 = vsel %vm414_vm12, %v410_v44, inf }
 0x3f5   : > { %416 = vmin.xlane.f32.xlu2 %v415_v45  ;;  %v420_v48 = vshll.u32 %v419_v46, 16 }
 0x468   : > { %v417_v47 = vpop.xlane.xlu2 %416 }
 0x469   : > { %v418_v49 = vcvt.f32.s32 %v417_v47 }
 0x46b   : > { %v421_v50 = vadd.s32 %v420_v48, %v418_v49 }
 0x46d   : > { %424 = vst.msk [vmem:[#allocation3] sm:$0xff] %vm422_vm10, %v421_v50  ;;  %vm425_vm13 = vcmp.eq.s32.totalorder %v1392_v9, %v421_v50 }
 0x46e   : > { %v1412_v51 = vsel %vm425_vm13, -inf, %v403_v37 }
 0x46f   : > { %427 = vmax.xlane.f32.xlu0 %v1412_v51 }
 0x4e2   : > { %v1415_v52 = vpop.xlane.xlu0 %427 }
 0x4e3   : > { %446 = vst.msk [vmem:[#allocation2] sm:$0xff] %vm445_vm14, %v1415_v52  ;;  %vm429_vm10 = vcmp.eq.f32.partialorder %v1412_v51, %v1415_v52  ;;  %v1267_v52 = vmov 0  }
 0x4e4   : > { %v430_v34 = vsel %vm429_vm10, %v1392_v9, 1073741824  ;;  %1119 = vset.pattern.permute.xlu0 %v1267_v52 }
 0x4e5   : > { %v432_v35 = vshra.s32 %v430_v34, 16  ;;  %v431_v49 = vand.u32 65535, %v430_v34 }
 0x4e7   : > { %v434_v36 = vcvt.s32.f32 %v432_v35  ;;  %v433_v50 = vcvt.s32.f32 %v431_v49 }
 0x4ea   : > { %v448_v53 = vld [vmem:[#allocation2] sm:$0xff] }
 0x4eb   : > { %v451_v54 = vsel %vm450_vm15, %v448_v53, -inf }
 0x4ec   : > { %452 = vmax.xlane.f32.xlu1 %v451_v54 }
 0x55f   : > { %v453_v55 = vpop.xlane.xlu1 %452 }
 0x560   : > { %vm454_vm1 = vcmp.eq.f32.partialorder %v448_v53, %v453_v55  ;;  %487 = vst.msk [vmem:[#allocation2] sm:$0xff] %vm486_vm0, %v453_v55 }
 0x561   : > { %v455_v56 = vsel %vm454_vm1, %v1387_v6, 8  ;;  %vm603_vm1 = vcmask 31768  }
 0x562   : > { %v456_v57 = vsel %vm450_vm15, %v455_v56, 2147483647 }
 0x563   : > { %v458_v58 = vshra.s32 %v456_v57, 16  ;;  %v457_v60 = vand.u32 65535, %v456_v57 }
 0x565   : > { %v460_v59 = vcvt.s32.f32 %v458_v58  ;;  %v459_v62 = vcvt.s32.f32 %v457_v60 }
 0x567   : > { %461 = vmin.xlane.f32.xlu2 %v460_v59 }
 0x5da   : > { %v462_v61 = vpop.xlane.xlu2 %461 }
 0x5db   : > { %vm463_vm2 = vcmp.eq.f32.partialorder %v460_v59, %v462_v61  ;;  %v468_v0 = vcvt.f32.s32 %v462_v61 }
 0x5dc   : > { %v464_v63 = vsel %vm463_vm2, %v459_v62, inf }
 0x5dd   : > { %465 = vmin.xlane.f32.xlu0 %v464_v63  ;;  %v469_v2 = vshll.u32 %v468_v0, 16 }
 0x650   : > { %v466_v1 = vpop.xlane.xlu0 %465 }
 0x651   : > { %v467_v3 = vcvt.f32.s32 %v466_v1 }
 0x653   : > { %v1423_v7 = vadd.s32 %v469_v2, %v467_v3 }
 0x655   : > { %vm471_vm3 = vcmp.eq.s32.totalorder %v1387_v6, %v1423_v7 }
 0x656   : > { %v489_v11 = vsel %vm471_vm3, -inf, %v448_v53 }
 0x657   : > { %v490_v12 = vsel %vm450_vm15, %v489_v11, -inf }
 0x658   : > { %491 = vmax.xlane.f32.xlu1 %v490_v12 }
 0x6cb   : > { %v492_v13 = vpop.xlane.xlu1 %491 }
 0x6cc   : > { %vm493_vm5 = vcmp.eq.f32.partialorder %v489_v11, %v492_v13  ;;  %526 = vst.msk [vmem:[#allocation2] sm:$0xff] %vm525_vm4, %v492_v13 }
 0x6cd   : > { %v494_v14 = vsel %vm493_vm5, %v1387_v6, 8 }
 0x6ce   : > { %v495_v15 = vsel %vm450_vm15, %v494_v14, 2147483647 }
 0x6cf   : > { %v497_v16 = vshra.s32 %v495_v15, 16  ;;  %v496_v18 = vand.u32 65535, %v495_v15 }
 0x6d1   : > { %v499_v17 = vcvt.s32.f32 %v497_v16  ;;  %v498_v20 = vcvt.s32.f32 %v496_v18 }
 0x6d3   : > { %500 = vmin.xlane.f32.xlu2 %v499_v17 }
 0x746   : > { %v501_v19 = vpop.xlane.xlu2 %500 }
 0x747   : > { %vm502_vm6 = vcmp.eq.f32.partialorder %v499_v17, %v501_v19  ;;  %v507_v22 = vcvt.f32.s32 %v501_v19 }
 0x748   : > { %v503_v21 = vsel %vm502_vm6, %v498_v20, inf }
 0x749   : > { %504 = vmin.xlane.f32.xlu0 %v503_v21  ;;  %v508_v24 = vshll.u32 %v507_v22, 16 }
 0x7bc   : > { %v505_v23 = vpop.xlane.xlu0 %504 }
 0x7bd   : > { %v506_v25 = vcvt.f32.s32 %v505_v23 }
 0x7bf   : > { %v1434_v26 = vadd.s32 %v508_v24, %v506_v25 }
 0x7c1   : > { %vm510_vm7 = vcmp.eq.s32.totalorder %v1387_v6, %v1434_v26 }
 0x7c2   : > { %v528_v27 = vsel %vm510_vm7, -inf, %v489_v11  ;;  %v606_v11 = vmax.f32 %v1389_v8, %v1394_v10 }
 0x7c3   : > { %v529_v28 = vsel %vm450_vm15, %v528_v27, -inf }
 0x7c4   : > { %530 = vmax.xlane.f32.xlu1 %v529_v28  ;;  %v608_v49 = vsub.f32 %v1389_v8, %v606_v11 }
 0x837   : > { %v531_v29 = vpop.xlane.xlu1 %530 }
 0x838   : > { %vm532_vm9 = vcmp.eq.f32.partialorder %v528_v27, %v531_v29  ;;  %565 = vst.msk [vmem:[#allocation2] sm:$0xff] %vm564_vm8, %v531_v29 }
 0x839   : > { %v533_v30 = vsel %vm532_vm9, %v1387_v6, 8 }
 0x83a   : > { %v534_v31 = vsel %vm450_vm15, %v533_v30, 2147483647 }
 0x83b   : > { %v536_v32 = vshra.s32 %v534_v31, 16  ;;  %v535_v37 = vand.u32 65535, %v534_v31 }
 0x83d   : > { %v538_v33 = vcvt.s32.f32 %v536_v32  ;;  %v537_v39 = vcvt.s32.f32 %v535_v37 }
 0x83f   : > { %539 = vmin.xlane.f32.xlu2 %v538_v33 }
 0x847   : > { %435 = vmin.xlane.f32.xlu2 %v434_v36 }
 0x8b2   : > { %v540_v38 = vpop.xlane.xlu2 %539 }
 0x8b3   : > { %vm541_vm11 = vcmp.eq.f32.partialorder %v538_v33, %v540_v38  ;;  %v546_v41 = vcvt.f32.s32 %v540_v38 }
 0x8b4   : > { %v542_v40 = vsel %vm541_vm11, %v537_v39, inf }
 0x8b5   : > { %543 = vmin.xlane.f32.xlu0 %v542_v40  ;;  %v547_v43 = vshll.u32 %v546_v41, 16 }
 0x8ba   : > { %v436_v48 = vpop.xlane.xlu2 %435 }
 0x8bb   : > { %vm437_vm13 = vcmp.eq.f32.partialorder %v434_v36, %v436_v48  ;;  %v442_v57 = vcvt.f32.s32 %v436_v48 }
 0x8bc   : > { %v438_v51 = vsel %vm437_vm13, %v433_v50, inf }
 0x8bd   : > { %v443_v60 = vshll.u32 %v442_v57, 16 }
 0x928   : > { %v544_v42 = vpop.xlane.xlu0 %543 }
 0x929   : > { %v545_v44 = vcvt.f32.s32 %v544_v42 }
 0x92b   : > { %v548_v45 = vadd.s32 %v547_v43, %v545_v44 }
 0x92d   : > { %vm549_vm12 = vcmp.eq.s32.totalorder %v1387_v6, %v548_v45 }
 0x92e   : > { %v567_v46 = vsel %vm549_vm12, -inf, %v528_v27 }
 0x92f   : > { %v568_v47 = vsel %vm450_vm15, %v567_v46, -inf }
 0x930   : > { %569 = vmax.xlane.f32.xlu1 %v568_v47 }
 0x938   : > { %439 = vmin.xlane.f32.xlu1 %v438_v51 }
 0x9a3   : > { %v570_v53 = vpop.xlane.xlu1 %569 }
 0x9a4   : > { %vm571_vm2 = vcmp.eq.f32.partialorder %v567_v46, %v570_v53  ;;  %604 = vst.msk [vmem:[#allocation2] sm:$0xff] %vm603_vm1, %v570_v53 }
 0x9a5   : > { %v572_v54 = vsel %vm571_vm2, %v1387_v6, 8 }
 0x9a6   : > { %v573_v55 = vsel %vm450_vm15, %v572_v54, 2147483647  ;;  %v609_v54 = vmul.f32 1.442695, %v608_v49 }
 0x9a7   : > { %v575_v56 = vshra.s32 %v573_v55, 16  ;;  %v574_v20 = vand.u32 65535, %v573_v55 }
 0x9a9   : > { %v577_v58 = vcvt.s32.f32 %v575_v56  ;;  %v576_v22 = vcvt.s32.f32 %v574_v20 }
 0x9ab   : > { %578 = vmin.xlane.f32.xlu0 %v577_v58  ;;  %v440_v59 = vpop.xlane.xlu1 %439 }
 0x9ac   : > { %v441_v61 = vcvt.f32.s32 %v440_v59 }
 0x9ae   : > { %v444_v62 = vadd.s32 %v443_v60, %v441_v61 }
 0x9b0   : > { %447 = vst.msk [vmem:[#allocation3] sm:$0xff] %vm445_vm14, %v444_v62  ;;  %v607_v62 = vld [vmem:[#allocation4] sm:$0xff] }
 0x9b7   : > { %v449_v63 = vld [vmem:[#allocation3] sm:$0xff] }
 0x9b8   : > { %v472_v0 = vsel %vm471_vm3, %v449_v63, 0  ;;  %v511_v13 = vsel %vm510_vm7, %v449_v63, 0  ;;  %v550_v16 = vsel %vm549_vm12, %v449_v63, 0 }
 0x9b9   : > { %v473_v1 = vsel %vm450_vm15, %v472_v0, 0  ;;  %v512_v15 = vsel %vm450_vm15, %v511_v13, 0  ;;  %v551_v18 = vsel %vm450_vm15, %v550_v16, 0 }
 0x9ba   : > { %v475_v2 = vshrl.u32 %v473_v1, 16  ;;  %v474_v12 = vand.u32 65535, %v473_v1  ;;  %v513_v7 = vand.u32 65535, %v512_v15  ;;  %v552_v10 = vand.u32 65535, %v551_v18 }
 0x9bb   : > { %v514_v24 = vshrl.u32 %v512_v15, 16  ;;  %v553_v26 = vshrl.u32 %v551_v18, 16 }
 0x9bc   : > { %v477_v3 = vcvt.s32.f32 %v475_v2  ;;  %v476_v14 = vcvt.s32.f32 %v474_v12  ;;  %v515_v17 = vcvt.s32.f32 %v513_v7  ;;  %v554_v19 = vcvt.s32.f32 %v552_v10 }
 0x9bd   : > { %v516_v25 = vcvt.s32.f32 %v514_v24  ;;  %v555_v27 = vcvt.s32.f32 %v553_v26 }
 0x9be   : > { %480 = vadd.xlane.f32.xlu1 %v477_v3 }
 0x9bf   : > { %614 = vperm.xlu0 %1119, %v606_v11  }
 0x9c6   : > { %478 = vadd.xlane.f32.xlu1 %v476_v14 }
 0x9ce   : > { %517 = vadd.xlane.f32.xlu1 %v515_v17 }
 0x9d6   : > { %556 = vadd.xlane.f32.xlu1 %v554_v19 }
 0xa1e   : > { %v579_v21 = vpop.xlane.xlu0 %578 }
 0xa1f   : > { %vm580_vm14 = vcmp.eq.f32.partialorder %v577_v58, %v579_v21  ;;  %v585_v38 = vcvt.f32.s32 %v579_v21 }
 0xa20   : > { %v581_v23 = vsel %vm580_vm14, %v576_v22, inf }
 0xa21   : > { %582 = vmin.xlane.f32.xlu2 %v581_v23  ;;  %v586_v40 = vshll.u32 %v585_v38, 16 }
 0xa29   : > { %519 = vadd.xlane.f32.xlu2 %v516_v25 }
 0xa31   : > { %v615_v28 = vpop.permute.xlu0 %614  ;;  %558 = vadd.xlane.f32.xlu2 %v555_v27  ;;  %v481_v29 = vpop.xlane.xlu1 %480 }
 0xa32   : > { %v617_v30 = vsub.f32 %v1382_v4, %v615_v28  ;;  %v483_v32 = vcvt.f32.s32 %v481_v29 }
 0xa34   : > { %v618_v31 = vmul.f32 1.442695, %v617_v30  ;;  %v484_v34 = vshll.u32 %v483_v32, 16 }
 0xa36   : > { %1120 = vpow2.f32 %v618_v31 }
 0xa37   : > { %1122 = vpow2.f32 %v609_v54 }
 0xa39   : > { %v479_v33 = vpop.xlane.xlu1 %478 }
 0xa3a   : > { %v482_v35 = vcvt.f32.s32 %v479_v33 }
 0xa3c   : > { %v1121_v36 = vpop.eup %1120  ;;  %v485_v37 = vadd.s32 %v484_v34, %v482_v35 }
 0xa3d   : > { %620 = vadd.xlane.f32.xlu1 %v1121_v36  ;;  %v1123_v8 = vpop.eup %1122 }
 0xa3e   : > { %488 = vst.msk [vmem:[#allocation3] sm:$0xff] %vm486_vm0, %v485_v37 }
 0xa41   : > { %v518_v43 = vpop.xlane.xlu1 %517 }
 0xa42   : > { %v521_v51 = vcvt.f32.s32 %v518_v43 }
 0xa49   : > { %v557_v56 = vpop.xlane.xlu1 %556 }
 0xa4a   : > { %v560_v59 = vcvt.f32.s32 %v557_v56 }
 0xa94   : > { %v583_v39 = vpop.xlane.xlu2 %582 }
 0xa95   : > { %v584_v41 = vcvt.f32.s32 %v583_v39 }
 0xa97   : > { %v587_v42 = vadd.s32 %v586_v40, %v584_v41 }
 0xa99   : > { %vm588_vm3 = vcmp.eq.s32.totalorder %v1387_v6, %v587_v42 }
 0xa9a   : > { %v589_v44 = vsel %vm588_vm3, %v449_v63, 0  ;;  %v611_v63 = vmul.f32 %v1123_v8, %v607_v62 }
 0xa9b   : > { %v590_v45 = vsel %vm450_vm15, %v589_v44, 0 }
 0xa9c   : > { %v520_v46 = vpop.xlane.xlu2 %519  ;;  %v592_v47 = vshrl.u32 %v590_v45, 16  ;;  %v591_v55 = vand.u32 65535, %v590_v45 }
 0xa9d   : > { %v522_v48 = vcvt.f32.s32 %v520_v46 }
 0xa9e   : > { %v594_v50 = vcvt.s32.f32 %v592_v47  ;;  %v593_v58 = vcvt.s32.f32 %v591_v55 }
 0xa9f   : > { %v523_v52 = vshll.u32 %v522_v48, 16 }
 0xaa0   : > { %597 = vadd.xlane.f32.xlu2 %v594_v50 }
 0xaa1   : > { %v524_v53 = vadd.s32 %v523_v52, %v521_v51 }
 0xaa3   : > { %527 = vst.msk [vmem:[#allocation3] sm:$0xff] %vm525_vm4, %v524_v53 }
 0xaa4   : > { %v559_v6 = vpop.xlane.xlu2 %558 }
 0xaa5   : > { %v561_v57 = vcvt.f32.s32 %v559_v6 }
 0xaa7   : > { %v562_v60 = vshll.u32 %v561_v57, 16 }
 0xaa8   : > { %595 = vadd.xlane.f32.xlu2 %v593_v58 }
 0xaa9   : > { %v563_v61 = vadd.s32 %v562_v60, %v560_v59 }
 0xaab   : > { %566 = vst.msk [vmem:[#allocation3] sm:$0xff] %vm564_vm8, %v563_v61 }
 0xab0   : > { %v621_v0 = vpop.xlane.xlu1 %620 }
 0xab1   : > { %v622_v1 = vadd.f32 %v621_v0, %v611_v63 }
 0xab3   : > { %623 = vst.msk [vmem:[#allocation4] sm:$0xff] %vm486_vm0, %v622_v1 }
 0xb13   : > { %v598_v2 = vpop.xlane.xlu2 %597 }
 0xb14   : > { %v600_v3 = vcvt.f32.s32 %v598_v2 }
 0xb16   : > { %v601_v12 = vshll.u32 %v600_v3, 16 }
 0xb1b   : > { %v596_v11 = vpop.xlane.xlu2 %595 }
 0xb1c   : > { %v599_v13 = vcvt.f32.s32 %v596_v11  ;;  %625 = sbr.rel (%p329_p0) target bundleno = 3468 (0xd8c), region = 44 }
 0xb1e   : > { %v602_v14 = vadd.s32 %v601_v12, %v599_v13 }
 0xb20   : > { %605 = vst.msk [vmem:[#allocation3] sm:$0xff] %vm603_vm1, %v602_v14 }
 0xb21   : > { %v626_v15 = vld [vmem:[%s1564_s2] sm:$0xff]  ;;  %v1268_v7 = vmov 0   ;;  %v653_v26 = vshrl.u32 %v352_v5, 7  ;;  %v657_v28 = vmul.u32 2246822507, %v1392_v9  ;;  %v659_v30 = vstv %s650_s20  ;;  %v700_v49 = vld [vmem:[#allocation5] sm:$0xff] }
 0xb22   : > { %1124 = vset.pattern.permute.xlu0 %v1268_v7  ;;  %vm627_vm15 = vcmp.lt.f32.partialorder %v626_v15, 1e-05  ;;  %v702_v8 = vld [vmem:[#allocation7] sm:$0xff]  ;;  %v705_v1 = vld [vmem:[#allocation6] sm:$0xff] }
 0xb23   : > { %v628_v16 = vsel %vm627_vm15, 1.0, %v626_v15  ;;  %v656_v27 = vmul.u32 2654435761, %v653_v26 }
 0xb24   : > { %1125 = vrcp.f32 %v628_v16  ;;  %v640_v10 = vand.u32 2147483648, %v628_v16  ;;  %vm634_vm4 = vweird.f32 %v628_v16  ;;  %v638_v20 = vand.u32 2147483647, %v628_v16 }
 0xb25   : > { %v658_v29 = vadd.s32 %v657_v28, %v656_v27 }
 0xb26   : > { %v641_v22 = vor.u32 1.1754944e-38, %v640_v10  ;;  %vm639_vm7 = vcmp.eq.f32.partialorder %v638_v20, 8.507059e+37 }
 0xb27   : > { %v660_v31 = vxor.u32 %v659_v30, %v658_v29 }
 0xb29   : > { %v661_v32 = vshrl.u32 %v660_v31, 15 }
 0xb2a   : > { %v1126_v17 = vpop.eup %1125 }
 0xb2b   : > { %v630_v18 = vmul.f32 %v1126_v17, %v628_v16  ;;  %vm635_vm5 = vweird.f32 %v1126_v17  ;;  %v662_v33 = vxor.u32 %v661_v32, %v660_v31 }
 0xb2c   : > { %vm636_vm6 = vmor %vm634_vm4, %vm635_vm5 }
 0xb2d   : > { %v631_v19 = vsub.f32 1.0, %v630_v18  ;;  %v663_v34 = vmul.u32 3266489909, %v662_v33 }
 0xb2f   : > { %v632_v21 = vmul.f32 %v1126_v17, %v631_v19  ;;  %v664_v35 = vshrl.u32 %v663_v34, 13 }
 0xb31   : > { %v633_v23 = vadd.f32 %v1126_v17, %v632_v21  ;;  %v665_v36 = vxor.u32 %v664_v35, %v663_v34 }
 0xb33   : > { %v637_v24 = vsel %vm636_vm6, %v1126_v17, %v633_v23  ;;  %v666_v37 = vshrl.u32 %v665_v36, 9 }
 0xb34   : > { %v642_v25 = vsel %vm639_vm7, %v641_v22, %v637_v24 }
 0xb35   : > { %646 = vperm.xlu0 %1124, %v642_v25   ;;  %v667_v38 = vor.u32 1065353216, %v666_v37 }
 0xb37   : > { %v1041_v39 = vadd.f32 -1.0, %v667_v38 }
 0xb39   : > { %v670_v40 = vadd.f32 2.9802322e-08, %v1041_v39 }
 0xb3b   : > { %1127 = vlog2.f32 %v670_v40 }
 0xb41   : > { %v1128_v41 = vpop.eup %1127 }
 0xb42   : > { %v672_v42 = vmul.f32 0.6931472, %v1128_v41 }
 0xb44   : > { %v673_v43 = vsub.f32 0.0, %v672_v42 }
 0xb46   : > { %1129 = vlog2.f32 %v673_v43 }
 0xb4c   : > { %v1130_v5 = vpop.eup %1129 }
 0xb4d   : > { %v675_v44 = vmul.f32 0.6931472, %v1130_v5 }
 0xb4f   : > { %v676_v45 = vsub.f32 0.0, %v675_v44 }
 0xba7   : > { %v647_v46 = vpop.permute.xlu0 %646 }
 0xba8   : > { %v649_v47 = vmul.f32 %v647_v46, %v1382_v4 }
 0xbaa   : > { %v677_v48 = vadd.f32 %v676_v45, %v649_v47 }
 0xbac   : > { %678 = vmax.xlane.f32.xlu0 %v677_v48 }
 0xc1f   : > { %v679_v50 = vpop.xlane.xlu0 %678 }
 0xc20   : > { %vm680_vm8 = vcmp.eq.f32.partialorder %v677_v48, %v679_v50  ;;  %vm701_vm9 = vcmp.gt.f32.partialorder %v679_v50, %v700_v49  ;;  %v709_v51 = vmax.f32 %v700_v49, %v679_v50 }
 0xc21   : > { %v681_v52 = vsel %vm680_vm8, %v1392_v9, 1073741824 }
 0xc22   : > { %710 = vst.msk [vmem:[#allocation5] sm:$0xff] %vm486_vm0, %v709_v51  ;;  %v683_v53 = vshra.s32 %v681_v52, 16  ;;  %v682_v55 = vand.u32 65535, %v681_v52 }
 0xc24   : > { %v685_v54 = vcvt.s32.f32 %v683_v53  ;;  %v684_v6 = vcvt.s32.f32 %v682_v55 }
 0xc26   : > { %686 = vmin.xlane.f32.xlu1 %v685_v54 }
 0xc99   : > { %v687_v56 = vpop.xlane.xlu1 %686 }
 0xc9a   : > { %vm688_vm10 = vcmp.eq.f32.partialorder %v685_v54, %v687_v56  ;;  %v693_v58 = vcvt.f32.s32 %v687_v56 }
 0xc9b   : > { %v689_v57 = vsel %vm688_vm10, %v684_v6, inf }
 0xc9c   : > { %690 = vmin.xlane.f32.xlu1 %v689_v57  ;;  %v694_v60 = vshll.u32 %v693_v58, 16 }
 0xd0f   : > { %v691_v59 = vpop.xlane.xlu1 %690 }
 0xd10   : > { %v692_v61 = vcvt.f32.s32 %v691_v59 }
 0xd12   : > { %v695_v62 = vadd.s32 %v694_v60, %v692_v61 }
 0xd14   : > { %v703_v63 = vsel %vm701_vm9, %v695_v62, %v702_v8  ;;  %vm696_vm11 = vcmp.eq.s32.totalorder %v1392_v9, %v695_v62 }
 0xd15   : > { %704 = vst.msk [vmem:[#allocation7] sm:$0xff] %vm486_vm0, %v703_v63  ;;  %v697_v0 = vsel %vm696_vm11, %v1382_v4, 0.0 }
 0xd16   : > { %698 = vadd.xlane.f32.xlu2 %v697_v0 }
 0xd89   : > { %v699_v2 = vpop.xlane.xlu2 %698 }
 0xd8a   : > { %v706_v3 = vsel %vm701_vm9, %v699_v2, %v705_v1 }
 0xd8b   : > { %707 = vst.msk [vmem:[#allocation6] sm:$0xff] %vm486_vm0, %v706_v3 }
 0xd8c PF: > { %p712_p5 = pnand %p1369_p3, %p294_p8 }
 0xd8d   : > { %s1042_s7 = sshll.u32 (!%p712_p5), %s1244_s22, 7  ;;  %s759_s8 = sld [smem:[#allocation10]] (!%p712_p5) }
 0xd8e   : > { %715 = sbr.rel (%p712_p5) target bundleno = 4102 (0x1006), region = 48 }
 0xd93   : > { %v722_v9 = vld [vmem:[%s1564_s2] sm:$0xff]  ;;  %v1269_v4 = vmov 0   ;;  %v717_v26 = vlaneseq  ;;  %v720_v28 = vstv %s1042_s7  ;;  %v768_v34 = vstv %s759_s8  ;;  %v809_v56 = vld [vmem:[#allocation5] sm:$0xff] }
 0xd94   : > { %1131 = vset.pattern.permute.xlu0 %v1269_v4  ;;  %vm723_vm12 = vcmp.lt.f32.partialorder %v722_v9, 1e-05  ;;  %v726_v12 = vld [vmem:[%s1565_s3] sm:$0xff]  ;;  %vm813_vm3 = vcmask 7168  }
 0xd95   : > { %v724_v11 = vsel %vm723_vm12, 1.0, %v722_v9  ;;  %v725_v24 = vld [vmem:[#allocation2] sm:$0xff]  ;;  %v718_v27 = vand.u32 127, %v717_v26  ;;  %v762_v30 = vshrl.u32 %v717_v26, 7  ;;  %v811_v9 = vld [vmem:[#allocation7] sm:$0xff] }
 0xd96   : > { %1132 = vrcp.f32 %v724_v11  ;;  %v748_v15 = vand.u32 2147483648, %v724_v11  ;;  %vm742_vm0 = vweird.f32 %v724_v11  ;;  %v746_v16 = vand.u32 2147483647, %v724_v11  ;;  %v716_v50 = vld [vmem:[%s1376_s16] sm:$0xff] }
 0xd97   : > { %1134 = vlog2.f32 %v726_v12  ;;  %v721_v29 = vadd.s32 %v720_v28, %v718_v27  ;;  %v765_v31 = vmul.u32 2654435761, %v762_v30 }
 0xd98   : > { %v749_v10 = vor.u32 1.1754944e-38, %v748_v15  ;;  %vm747_vm2 = vcmp.eq.f32.partialorder %v746_v16, 8.507059e+37 }
 0xd99   : > { %v766_v32 = vmul.u32 2246822507, %v721_v29 }
 0xd9b   : > { %v767_v33 = vadd.s32 %v766_v32, %v765_v31 }
 0xd9c   : > { %v1133_v13 = vpop.eup %1132 }
 0xd9d   : > { %v738_v14 = vmul.f32 %v1133_v13, %v724_v11  ;;  %vm743_vm13 = vweird.f32 %v1133_v13  ;;  %v1135_v17 = vpop.eup %1134  ;;  %v769_v35 = vxor.u32 %v768_v34, %v767_v33 }
 0xd9e   : > { %vm744_vm1 = vmor %vm742_vm0, %vm743_vm13  ;;  %v728_v20 = vmul.f32 0.6931472, %v1135_v17 }
 0xd9f   : > { %v739_v7 = vsub.f32 1.0, %v738_v14  ;;  %v770_v36 = vshrl.u32 %v769_v35, 15 }
 0xda0   : > { %v729_v23 = vmul.f32 %v728_v20, %v724_v11 }
 0xda1   : > { %v740_v18 = vmul.f32 %v1133_v13, %v739_v7  ;;  %v771_v37 = vxor.u32 %v770_v36, %v769_v35 }
 0xda2   : > { %v730_v25 = vadd.f32 %v729_v23, %v725_v24 }
 0xda3   : > { %v741_v19 = vadd.f32 %v1133_v13, %v740_v18  ;;  %v772_v38 = vmul.u32 3266489909, %v771_v37 }
 0xda5   : > { %v745_v21 = vsel %vm744_vm1, %v1133_v13, %v741_v19  ;;  %v773_v39 = vshrl.u32 %v772_v38, 13  ;;  %v815_v13 = vld [vmem:[#allocation6] sm:$0xff] }
 0xda6   : > { %v750_v22 = vsel %vm747_vm2, %v749_v10, %v745_v21 }
 0xda7   : > { %754 = vperm.xlu0 %1131, %v750_v22   ;;  %v774_v40 = vxor.u32 %v773_v39, %v772_v38 }
 0xda9   : > { %v775_v41 = vshrl.u32 %v774_v40, 9 }
 0xdab   : > { %v776_v42 = vor.u32 1065353216, %v775_v41 }
 0xdad   : > { %v1043_v43 = vadd.f32 -1.0, %v776_v42 }
 0xdaf   : > { %733 = vperm.xlu0 %1131, %v730_v25   ;;  %v779_v5 = vadd.f32 2.9802322e-08, %v1043_v43 }
 0xdb1   : > { %1136 = vlog2.f32 %v779_v5 }
 0xdb7   : > { %v1137_v44 = vpop.eup %1136 }
 0xdb8   : > { %v781_v45 = vmul.f32 0.6931472, %v1137_v44 }
 0xdba   : > { %v782_v46 = vsub.f32 0.0, %v781_v45 }
 0xdbc   : > { %1138 = vlog2.f32 %v782_v46 }
 0xdc2   : > { %v1139_v47 = vpop.eup %1138 }
 0xdc3   : > { %v784_v49 = vmul.f32 0.6931472, %v1139_v47 }
 0xdc5   : > { %v785_v51 = vsub.f32 0.0, %v784_v49 }
 0xe19   : > { %v755_v48 = vpop.permute.xlu0 %754 }
 0xe1a   : > { %v757_v52 = vmul.f32 %v755_v48, %v716_v50 }
 0xe21   : > { %v734_v53 = vpop.permute.xlu0 %733 }
 0xe22   : > { %vm736_vm14 = vcmp.ge.f32.partialorder %v716_v50, %v734_v53 }
 0xe23   : > { %v758_v54 = vsel %vm736_vm14, %v757_v52, -inf }
 0xe24   : > { %v786_v55 = vadd.f32 %v785_v51, %v758_v54 }
 0xe26   : > { %787 = vmax.xlane.f32.xlu1 %v786_v55 }
 0xe99   : > { %v788_v6 = vpop.xlane.xlu1 %787 }
 0xe9a   : > { %vm789_vm15 = vcmp.eq.f32.partialorder %v786_v55, %v788_v6  ;;  %v819_v57 = vmax.f32 %v809_v56, %v788_v6  ;;  %vm810_vm5 = vcmp.gt.f32.partialorder %v788_v6, %v809_v56 }
 0xe9b   : > { %v790_v58 = vsel %vm789_vm15, %v721_v29, 1073741824 }
 0xe9c   : > { %v792_v59 = vshra.s32 %v790_v58, 16  ;;  %820 = vst.msk [vmem:[#allocation5] sm:$0xff] %vm813_vm3, %v819_v57  ;;  %v791_v61 = vand.u32 65535, %v790_v58 }
 0xe9e   : > { %v794_v60 = vcvt.s32.f32 %v792_v59  ;;  %v793_v62 = vcvt.s32.f32 %v791_v61 }
 0xea0   : > { %795 = vmin.xlane.f32.xlu1 %v794_v60 }
 0xf13   : > { %v796_v8 = vpop.xlane.xlu1 %795 }
 0xf14   : > { %vm797_vm4 = vcmp.eq.f32.partialorder %v794_v60, %v796_v8  ;;  %v802_v0 = vcvt.f32.s32 %v796_v8 }
 0xf15   : > { %v798_v63 = vsel %vm797_vm4, %v793_v62, inf }
 0xf16   : > { %799 = vmin.xlane.f32.xlu2 %v798_v63  ;;  %v803_v2 = vshll.u32 %v802_v0, 16 }
 0xf89   : > { %v800_v1 = vpop.xlane.xlu2 %799 }
 0xf8a   : > { %v801_v3 = vcvt.f32.s32 %v800_v1 }
 0xf8c   : > { %v804_v4 = vadd.s32 %v803_v2, %v801_v3 }
 0xf8e   : > { %v812_v11 = vsel %vm810_vm5, %v804_v4, %v811_v9  ;;  %vm805_vm6 = vcmp.eq.s32.totalorder %v721_v29, %v804_v4 }
 0xf8f   : > { %v806_v12 = vsel %vm805_vm6, %v716_v50, 0.0  ;;  %814 = vst.msk [vmem:[#allocation7] sm:$0xff] %vm813_vm3, %v812_v11 }
 0xf90   : > { %807 = vadd.xlane.f32.xlu2 %v806_v12 }
0x1003   : > { %v808_v14 = vpop.xlane.xlu2 %807 }
0x1004   : > { %v816_v15 = vsel %vm810_vm5, %v808_v14, %v815_v13 }
0x1005   : > { %817 = vst.msk [vmem:[#allocation6] sm:$0xff] %vm813_vm3, %v816_v15 }
0x1006 PF: > { %p1044_p6 = scmp.ne.s32.totalorder %s1248_s23, 2 }
0x1007   : > { %p1045_p7 = scmp.ne.s32.totalorder (!%p1044_p6), %s1244_s22, 1 }
0x1008   : > { %824 = sbr.rel (%p1044_p6) target bundleno = 4605 (0x11fd), region = 52 }
0x100d   : > { %v826_v7 = vld [vmem:[%s1564_s2] sm:$0xff]  ;;  %v1270_v18 = vmov 0   ;;  %v831_v31 = vld [vmem:[#allocation8] sm:$0xff]  ;;  %vm852_vm9 = vcmask 7168   ;;  %s1272_s23 = smov (!%p1045_p7), 5   ;;  %s1273_s11 = smov (!%p1045_p7), 1  }
0x100e   : > { %v828_v16 = vld [vmem:[#allocation2] sm:$0xff]  ;;  %1140 = vset.pattern.permute.xlu0 %v1270_v18  ;;  %vm827_vm7 = vcmp.lt.f32.partialorder %v826_v7, 1e-05 }
0x100f   : > { %v829_v17 = vld [vmem:[#allocation6] sm:$0xff] }
0x1010   : > { %v830_v10 = vsel %vm827_vm7, %v828_v16, %v829_v17  ;;  %v825_v19 = vld [vmem:[%s1376_s16] sm:$0xff] }
0x1011   : > { %834 = vperm.xlu0 %1140, %v830_v10  }
0x1083   : > { %v835_v20 = vpop.permute.xlu0 %834 }
0x1084   : > { %vm837_vm8 = vcmp.ge.f32.partialorder %v825_v19, %v835_v20 }
0x1085   : > { %v838_v21 = vsel %vm837_vm8, 1, %v1270_v18 }
0x1086   : > { %v840_v22 = vshrl.u32 %v838_v21, 16  ;;  %v839_v23 = vand.u32 65535, %v838_v21 }
0x1088   : > { %v842_v24 = vcvt.s32.f32 %v840_v22  ;;  %v841_v25 = vcvt.s32.f32 %v839_v23 }
0x108a   : > { %845 = vadd.xlane.f32.xlu0 %v842_v24  ;;  %843 = vadd.xlane.f32.xlu1 %v841_v25 }
0x10fd   : > { %v846_v26 = vpop.xlane.xlu0 %845  ;;  %v844_v27 = vpop.xlane.xlu1 %843 }
0x10fe   : > { %v848_v28 = vcvt.f32.s32 %v846_v26  ;;  %v847_v30 = vcvt.f32.s32 %v844_v27 }
0x1100   : > { %v849_v29 = vshll.u32 %v848_v28, 16 }
0x1102   : > { %v850_v32 = vadd.s32 %v849_v29, %v847_v30  ;;  %857 = sbr.rel (%p1045_p7) target bundleno = 4605 (0x11fd), region = 56 }
0x1104   : > { %v851_v33 = vadd.s32 %v850_v32, %v831_v31 }
0x1106   : > { %853 = vst.msk [vmem:[#allocation8] sm:$0xff] %vm852_vm9, %v851_v33 }
0x1107   : > { %v861_v34 = vld [vmem:[#allocation4] sm:$0xff]  ;;  %v1271_v36 = vmov 0   ;;  %v866_v41 = vld [vmem:[#allocation3] sm:$0xff]  ;;  %v878_v5 = vld [vmem:[#allocation2] sm:$0xff]  ;;  %vm869_vm10 = vcmask 39944   ;;  %vm874_vm11 = vcmask 48168  }
0x1108   : > { %1141 = vset.pattern.permute.xlu0 %v1271_v36  ;;  %1142 = vlog2.f32 %v861_v34  ;;  %v859_v42 = vld [vmem:[#allocation7] sm:$0xff]  ;;  %vm890_vm12 = vcmask 64560   ;;  %vm892_vm0 = vcmask 64552   ;;  %v1274_v49 = vmov 0.0  }
0x1109   : > { %v860_v43 = vsel %vm827_vm7, %v866_v41, %v859_v42 }
0x110a   : > { %865 = vst.msk [vmem:[#allocation11] sm:$0xff] %vm852_vm9, %v860_v43 }
0x110d   : > { %v871_v35 = vld [vmem:[#allocation8] sm:$0xff] }
0x110e   : > { %872 = vrot.lane.b32.xlu1 %v871_v35, %s1272_s23  ;;  %v1143_v37 = vpop.eup %1142 }
0x110f   : > { %v863_v38 = vmul.f32 0.6931472, %v1143_v37 }
0x1111   : > { %v864_v39 = vadd.f32 %v863_v38, %v828_v16 }
0x1113   : > { %881 = vperm.xlu0 %1141, %v864_v39   ;;  %v876_v40 = vsub.f32 %v830_v10, %v864_v39 }
0x1115   : > { %877 = vst.msk [vmem:[#allocation13] sm:$0xff] %vm852_vm9, %v876_v40 }
0x111b   : > { %867 = vrot.lane.b32.xlu0 %v866_v41, %s1273_s11 }
0x1180   : > { %v873_v46 = vpop.permute.xlu1 %872 }
0x1185   : > { %v882_v44 = vpop.permute.xlu0 %881 }
0x1186   : > { %v884_v45 = vsub.f32 %v878_v5, %v882_v44 }
0x1188   : > { %886 = vrot.lane.b32.xlu1 %v884_v45, %s1273_s11 }
0x118d   : > { %v868_v47 = vpop.permute.xlu0 %867 }
0x118e   : > { %870 = vst.msk [vmem:[#allocation11] sm:$0xff] %vm869_vm10, %v868_v47 }
0x118f   : > { %875 = vst.msk [vmem:[#allocation11] sm:$0xff] %vm874_vm11, %v873_v46 }
0x1190   : > { %891 = vst.msk [vmem:[#allocation11] sm:$0xff] %vm890_vm12, %v1271_v36 }
0x11fa   : > { %v887_v48 = vpop.permute.xlu1 %886 }
0x11fb   : > { %889 = vst.msk [vmem:[#allocation13] sm:$0xff] %vm869_vm10, %v887_v48 }
0x11fc   : > { %893 = vst.msk [vmem:[#allocation13] sm:$0xff] %vm892_vm0, %v1274_v49 }
0x11fd PF: > { %p1525_p8 = scmp.eq.s32.totalorder %s1025_s0, 5  ;;  %s904_s14 = sshll.u32 %s1566_s4, 4  ;;  %s905_s14 = int_to_ptr.hbm [resolvable:$true] %s904_s14 }
0x11fe   : > { %s1275_s15 = smov [#allocation11]   ;;  %s1276_s17 = smov [#allocation13]  }
0x11ff   : > { %s902_s16 = sshll.u32 %s1275_s15, 4  ;;  %s916_s18 = sshll.u32 %s1276_s17, 4  ;;  %s903_s16 = int_to_ptr.vmem [resolvable:$true] %s902_s16  ;;  %s917_s18 = int_to_ptr.vmem [resolvable:$true] %s916_s18 }
0x1200   : > { %1053 = dma.vmem_to_hbm [thread:$0]  (%p1525_p8), %s903_s16, 128, %s905_s14, [#allocation12]  }
0x1201   : > { %s918_s20 = sshll.u32 %s1567_s5, 4  ;;  %s919_s20 = int_to_ptr.hbm [resolvable:$true] %s918_s20 }
0x1202   : > { %1055 = dma.vmem_to_hbm [thread:$0]  (%p1525_p8), %s917_s18, 128, %s919_s20, [#allocation14]  }
0x1203   : > { %1235 = dma.done.wait (%p1525_p8), [#allocation12], 128  }
0x1204   : > { %1237 = vsyncadd (%p1525_p8), [#allocation12], 4294967168 }
0x1205   : > { %1239 = dma.done.wait (%p1525_p8), [#allocation14], 128  }
0x1206   : > { %1241 = vsyncadd (%p1525_p8), [#allocation14], 4294967168 }
0x1207 PF: > { %s26_s26 = sadd.s32 1, %s1260_s26   ;;  %s1573_s22 = smov %s1252_s24 }
0x1208   : > { %p23_p9 = scmp.ge.s32.totalorder %s26_s26, 8   ;;  %s1574_s23 = smov %s1256_s25 }
0x1209   : > { %s1575_s24 = smov %s1578_s27  ;;  %s1576_s25 = smov %s1582_s28 }
0x120a   :  { %25 = sbr.rel (!%p23_p9) target bundleno = 10 (0xa), region = 99 }
0x120f   :  { %937 = vsyncpa [#allocation12], 1 }
0x1210   :  { %939 = vsyncpa [#allocation12 + $0x1], 1 }
0x1211   :  { %940 = vsyncpa [#allocation14], 1 }

</bundles_post_ra>
